<compile_context>
chip_gen: v6e
topology: v6e:2x2x1
jax: 0.10.0
libtpu: 0.0.40
codegen_flags: <defaults>
</compile_context>

<pallas_src>
import functools

import jax
import jax.numpy as jnp
from jax.experimental import pallas as pl
from jax.experimental.pallas import tpu as pltpu


def _round_up(x, m):
    return (x + m - 1) // m * m


def _vmem_limit_bytes():
    """~75% of physical VMEM: ~96 MiB on v5e/v6e (128 MiB), ~48 MiB on v7x (64 MiB)."""
    try:
        cap = int(getattr(pltpu.get_tpu_info(), "vmem_capacity_bytes", 0))
    except Exception:
        cap = 0
    if cap <= 0:
        cap = 64 * 1024 * 1024          # conservative fallback (fits every generation)
    return (cap // 4) * 3


def _pick_block_graphs(B, N, rows_cap):
    """Largest divisor of B with bt*N <= rows_cap, preferring >= 2 blocks (megacore)."""
    candidates = [c for c in range(1, B + 1) if B % c == 0 and c * N <= rows_cap]
    if not candidates:
        return 1
    multi = [c for c in candidates if B // c >= 2]
    return max(multi) if multi else max(candidates)


# -----------------------------------------------------------------------------
# Pallas kernel: one graph-block per grid step; all heads processed in-kernel.
# -----------------------------------------------------------------------------
def _attention_kernel(x_ref, wqkv_ref, bqkv_ref, wo_ref, bo_ref, o_ref,
                      *, n_heads, hd_pad):
    bt, n, dp = x_ref.shape          # graphs per block, padded nodes, padded d_model
    rows = bt * n
    cd = x_ref.dtype                 # MXU input dtype (f32 default; bf16 optional)
    hw = n_heads * hd_pad            # width of one fused K / Q / V slab

    xf = x_ref[...].reshape(rows, dp)                                  # (R, Dp)

    # One fused QKV projection: (R, Dp) @ (Dp, 3*H*hd_pad).  Layout of the output
    # columns: [K heads | Q heads | V heads], each head zero-padded to hd_pad.
    # 1/sqrt(hd) is already folded into the Q columns host-side.
    qkv = jnp.dot(xf, wqkv_ref[...],
                  preferred_element_type=jnp.float32) + bqkv_ref[...]   # (R, 3*hw) f32
    k_all = qkv[:, 0 * hw:1 * hw].astype(cd)
    q_all = qkv[:, 1 * hw:2 * hw].astype(cd)
    v_all = qkv[:, 2 * hw:3 * hw].astype(cd)

    head_outs = []
    for h in range(n_heads):                          # static unroll (H is small)
        sl = slice(h * hd_pad, (h + 1) * hd_pad)      # static, 128-aligned lane slice
        kb = k_all[:, sl].reshape(bt, n, hd_pad)
        qb = q_all[:, sl].reshape(bt, n, hd_pad)
        vb = v_all[:, sl].reshape(bt, n, hd_pad)

        # scores[b, i, j] = K_i . Q_j   (matches torch einsum 'bihx,bjhx->bhij').
        s = jnp.einsum("bid,bjd->bij", kb, qb,
                       preferred_element_type=jnp.float32)             # (bt, n, n)

        # Softmax over j in f32; padded (fake) node positions are intentionally
        # included, exactly like the PyTorch reference (no N padding is added).
        m = jnp.max(s, axis=-1, keepdims=True)
        e = jnp.exp(s - m)
        l = jnp.sum(e, axis=-1, keepdims=True)
        r = pl.reciprocal(l, approx=True)             # EUP fast path (free bundle slot)
        r = r * (2.0 - l * r)                         # one Newton step -> ~f32 accuracy

        # Unnormalized PV matmul ('bhij,bjhx->bihx'), then scale by 1/l on the much
        # smaller (bt, n, hd_pad) result instead of the (bt, n, n) probabilities.
        o_h = jnp.einsum("bij,bjd->bid", e.astype(cd), vb,
                         preferred_element_type=jnp.float32)           # (bt, n, hd_pad)
        o_h = o_h * r
        head_outs.append(o_h.reshape(rows, hd_pad).astype(cd))

    # Head merge + final_linear: single deep-contraction matmul (H*hd_pad >= 256).
    o_cat = jnp.concatenate(head_outs, axis=-1)                        # (R, H*hd_pad)
    out = jnp.dot(o_cat, wo_ref[...],
                  preferred_element_type=jnp.float32) + bo_ref[...]    # (R, Dp)
    o_ref[...] = out.reshape(bt, n, dp).astype(o_ref.dtype)


# -----------------------------------------------------------------------------
# Wrapper: host-side fused-QKV weight layout + 128-lane padding, then pallas_call.
# -----------------------------------------------------------------------------
def vanilla_attention_dense(x_dense, params, n_heads, *,
                            block_graphs=None, mxu_dtype=None,
                            vmem_limit_bytes=None):
    """Attention over dense-batched inputs x_dense: [B, N, D]."""
    B, N, D = x_dense.shape
    assert D % n_heads == 0
    hd = D // n_heads
    scaling = hd ** (-0.5)
    d_pad = _round_up(D, 128)      # lane-dense feature dim (in/out of the kernel)
    hd_pad = _round_up(hd, 128)    # lane-dense per-head dim
    hw = n_heads * hd_pad
    if mxu_dtype is None:
        mxu_dtype = x_dense.dtype  # pass jnp.bfloat16 on v6e/v7x at production scales

    # ---- host-side layout plumbing (zero padding is numerically exact) ----
    def pad_heads_w(w_t, scale=1.0):             # (D,D) in->out; split/pad the out dim
        w = (w_t * scale).reshape(D, n_heads, hd)                       # (D, H, hd)
        w = jnp.pad(w, ((0, d_pad - D), (0, 0), (0, hd_pad - hd)))      # (Dp, H, hdp)
        return w.reshape(d_pad, hw)

    def pad_heads_b(b, scale=1.0):               # (1,D) -> (1, H*hd_pad)
        bh = (b * scale).reshape(n_heads, hd)
        bh = jnp.pad(bh, ((0, 0), (0, hd_pad - hd)))
        return bh.reshape(1, hw)

    # Fused QKV slab: columns = [K heads | Q heads | V heads]; scaling folded into Q.
    wqkv = jnp.concatenate([pad_heads_w(params["wk_t"]),
                            pad_heads_w(params["wq_t"], scaling),
                            pad_heads_w(params["wv_t"])], axis=-1).astype(mxu_dtype)
    bqkv = jnp.concatenate([pad_heads_b(params["bk"]),
                            pad_heads_b(params["bq"], scaling),
                            pad_heads_b(params["bv"])], axis=-1).astype(jnp.float32)

    # final_linear: rows of W_O^T correspond to the concatenated head outputs.
    wo = params["wo_t"].reshape(n_heads, hd, D)                         # (H, hd, D)
    wo = jnp.pad(wo, ((0, 0), (0, hd_pad - hd), (0, d_pad - D)))        # (H, hdp, Dp)
    wo = wo.reshape(hw, d_pad).astype(mxu_dtype)
    bo = jnp.pad(params["bo"], ((0, 0), (0, d_pad - D))).astype(jnp.float32)

    x_pad = jnp.pad(x_dense, ((0, 0), (0, 0), (0, d_pad - D))).astype(mxu_dtype)

    # ---- generation-aware budgets ----
    if vmem_limit_bytes is None:
        vmem_limit_bytes = _vmem_limit_bytes()
    rows_cap = 1024 if vmem_limit_bytes >= 80 * 1024 * 1024 else 512

    if block_graphs is None:
        block_graphs = _pick_block_graphs(B, N, rows_cap)
    bt = block_graphs
    assert B % bt == 0, "block_graphs must divide the number of graphs"
    nb = B // bt

    # Weights/biases use constant index_maps -> fetched into VMEM once for the grid.
    x_spec = pl.BlockSpec((bt, N, d_pad), lambda b: (b, 0, 0))
    wqkv_spec = pl.BlockSpec((d_pad, 3 * hw), lambda b: (0, 0))
    bqkv_spec = pl.BlockSpec((1, 3 * hw), lambda b: (0, 0))
    wo_spec = pl.BlockSpec((hw, d_pad), lambda b: (0, 0))
    bo_spec = pl.BlockSpec((1, d_pad), lambda b: (0, 0))
    out_spec = pl.BlockSpec((bt, N, d_pad), lambda b: (b, 0, 0))

    kernel = functools.partial(_attention_kernel, n_heads=n_heads, hd_pad=hd_pad)

    out_pad = pl.pallas_call(
        kernel,
        out_shape=jax.ShapeDtypeStruct((B, N, d_pad), x_dense.dtype),
        grid=(nb,),
        in_specs=[x_spec, wqkv_spec, bqkv_spec, wo_spec, bo_spec],
        out_specs=out_spec,
        compiler_params=pltpu.CompilerParams(
            dimension_semantics=("parallel",),
            vmem_limit_bytes=vmem_limit_bytes),
    )(x_pad, wqkv, bqkv, wo, bo)

    return out_pad[:, :, :D]       # drop the zero-padded feature columns


# -----------------------------------------------------------------------------
# Plain-JAX glue: to_dense_batch + full forward pass.
# -----------------------------------------------------------------------------
def to_dense_batch(x, batch, num_graphs, max_nodes=None):
    """Equivalent of torch_geometric.utils.to_dense_batch (batch must be sorted)."""
    n_nodes, d = x.shape
    counts = jnp.bincount(batch, length=num_graphs)
    if max_nodes is None:
        max_nodes = int(jnp.max(counts))   # host sync; pass max_nodes for jit-ability
    offsets = jnp.concatenate([jnp.zeros((1,), counts.dtype), jnp.cumsum(counts)[:-1]])
    pos = jnp.arange(n_nodes) - offsets[batch]
    dense = jnp.zeros((num_graphs, max_nodes, d), x.dtype).at[batch, pos].set(x)
    mask = jnp.zeros((num_graphs, max_nodes), bool).at[batch, pos].set(True)
    return dense, mask


def vanilla_attention_forward(x, batch, num_graphs, params, n_heads,
                              max_nodes=None, mxu_dtype=None):
    x_dense, mask = to_dense_batch(x, batch, num_graphs, max_nodes)   # [B,N,D],[B,N]
    out_dense = vanilla_attention_dense(x_dense, params, n_heads, mxu_dtype=mxu_dtype)
    return out_dense[mask]          # keep only real nodes; dropout = identity (eval)


# -----------------------------------------------------------------------------
# Pure-JAX reference (for correctness check).
# -----------------------------------------------------------------------------
def _reference_forward(x, batch, num_graphs, params, n_heads, max_nodes=None):
    x_dense, mask = to_dense_batch(x, batch, num_graphs, max_nodes)
    D = x_dense.shape[-1]
    hd = D // n_heads
    scaling = hd ** (-0.5)
    k = x_dense @ params["wk_t"] + params["bk"][0]
    q = x_dense @ params["wq_t"] + params["bq"][0]
    v = x_dense @ params["wv_t"] + params["bv"][0]
    resh = lambda t: t.reshape(t.shape[0], t.shape[1], n_heads, hd)
    k, q, v = resh(k), resh(q), resh(v)
    s = jnp.einsum("bihx,bjhx->bhij", k, q) * scaling
    p = jax.nn.softmax(s, axis=-1)
    o = jnp.einsum("bhij,bjhx->bihx", p, v)
    o = o.reshape(o.shape[0], o.shape[1], D)
    out_dense = o @ params["wo_t"] + params["bo"][0]
    return out_dense[mask]


# -----------------------------------------------------------------------------
# Main
# -----------------------------------------------------------------------------
if __name__ == "__main__":
    d_model = 32
    n_heads = 4
    num_graphs = 2
    # graph 0 has 6 nodes, graph 1 has 8 nodes -> dense N = 8 (with padding)
    nodes_per_graph = [6, 8]
    total_nodes = sum(nodes_per_graph)
    max_nodes = max(nodes_per_graph)        # static: avoids a host sync inside glue

    key = jax.random.PRNGKey(0)
    keys = jax.random.split(key, 9)

    x = jax.random.normal(keys[0], (total_nodes, d_model), dtype=jnp.float32)
    batch = jnp.array(sum(([g] * n for g, n in enumerate(nodes_per_graph)), []),
                      dtype=jnp.int32)

    # Deterministic parameter init (torch.nn.Linear(d_model, d_model) shapes).
    def linear_params(kw, kb):
        w = jax.random.normal(kw, (d_model, d_model), dtype=jnp.float32) * 0.1  # (out, in)
        b = jax.random.normal(kb, (d_model,), dtype=jnp.float32) * 0.1
        return w, b

    wk, bk = linear_params(keys[1], keys[2])
    wq, bq = linear_params(keys[3], keys[4])
    wv, bv = linear_params(keys[5], keys[6])
    wo, bo = linear_params(keys[7], keys[8])

    params = {
        "wk_t": wk.T, "bk": bk.reshape(1, d_model),
        "wq_t": wq.T, "bq": bq.reshape(1, d_model),
        "wv_t": wv.T, "bv": bv.reshape(1, d_model),
        "wo_t": wo.T, "bo": bo.reshape(1, d_model),
    }

    out = vanilla_attention_forward(x, batch, num_graphs, params, n_heads,
                                    max_nodes=max_nodes)
    out = jax.block_until_ready(out)

    ref = _reference_forward(x, batch, num_graphs, params, n_heads,
                             max_nodes=max_nodes)
    assert out.shape == (total_nodes, d_model), out.shape
    assert jnp.allclose(out, ref, atol=1e-4, rtol=1e-4), "mismatch vs reference"

    print("KERNEL_OK")
</pallas_src>

<mosaic_0001>
module attributes {stable_mosaic.version = 11 : i64} {
  func.func @_attention_kernel(%arg0: i32, %arg1: memref<1x8x128xf32, #tpu.memory_space<vmem>>, %arg2: memref<128x1536xf32, #tpu.memory_space<vmem>>, %arg3: memref<1x1536xf32, #tpu.memory_space<vmem>>, %arg4: memref<512x128xf32, #tpu.memory_space<vmem>>, %arg5: memref<1x128xf32, #tpu.memory_space<vmem>>, %arg6: memref<1x8x128xf32, #tpu.memory_space<vmem>>) attributes {dimension_semantics = [#tpu.dimension_semantics<parallel>], iteration_bounds = array<i64: 2>, scalar_prefetch = 0 : i64, scratch_operands = 0 : i64, tpu.core_type = #tpu.core_type<tc>, window_params = [{transform_indices = @transform_0, window_bounds = array<i64: 1, 8, 128>}, {pipeline_mode = #tpu.pipeline_mode<synchronous>, transform_indices = @transform_1, window_bounds = array<i64: 128, 1536>}, {pipeline_mode = #tpu.pipeline_mode<synchronous>, transform_indices = @transform_2, window_bounds = array<i64: 1, 1536>}, {pipeline_mode = #tpu.pipeline_mode<synchronous>, transform_indices = @transform_3, window_bounds = array<i64: 512, 128>}, {pipeline_mode = #tpu.pipeline_mode<synchronous>, transform_indices = @transform_4, window_bounds = array<i64: 1, 128>}, {transform_indices = @transform_5, window_bounds = array<i64: 1, 8, 128>}]} {
    %c0 = arith.constant 0 : index
    %c0_0 = arith.constant 0 : index
    %c0_1 = arith.constant 0 : index
    %0 = vector.load %arg1[%c0, %c0_0, %c0_1] : memref<1x8x128xf32, #tpu.memory_space<vmem>>, vector<1x8x128xf32>
    %1 = vector.shape_cast %0 : vector<1x8x128xf32> to vector<8x128xf32>
    %c0_2 = arith.constant 0 : index
    %c0_3 = arith.constant 0 : index
    %2 = vector.load %arg2[%c0_2, %c0_3] : memref<128x1536xf32, #tpu.memory_space<vmem>>, vector<128x1536xf32>
    %cst = arith.constant dense<0.000000e+00> : vector<8x1536xf32>
    %3 = tpu.matmul %1, %2, %cst {dimension_numbers = #tpu.dot_dimension_numbers<[1], [0], [0], [1], [0, 0, 1, 1], [], []>} : vector<8x128xf32>, vector<128x1536xf32>, vector<8x1536xf32> -> vector<8x1536xf32>
    %c0_4 = arith.constant 0 : index
    %c0_5 = arith.constant 0 : index
    %4 = vector.load %arg3[%c0_4, %c0_5] : memref<1x1536xf32, #tpu.memory_space<vmem>>, vector<1x1536xf32>
    %5 = vector.broadcast %4 : vector<1x1536xf32> to vector<8x1536xf32>
    %6 = arith.addf %3, %5 : vector<8x1536xf32>
    %7 = vector.extract_strided_slice %6 {offsets = [0, 0], sizes = [8, 512], strides = [1, 1]} : vector<8x1536xf32> to vector<8x512xf32>
    %8 = vector.extract_strided_slice %6 {offsets = [0, 512], sizes = [8, 512], strides = [1, 1]} : vector<8x1536xf32> to vector<8x512xf32>
    %9 = vector.extract_strided_slice %6 {offsets = [0, 1024], sizes = [8, 512], strides = [1, 1]} : vector<8x1536xf32> to vector<8x512xf32>
    %10 = vector.extract_strided_slice %7 {offsets = [0, 0], sizes = [8, 128], strides = [1, 1]} : vector<8x512xf32> to vector<8x128xf32>
    %11 = vector.shape_cast %10 : vector<8x128xf32> to vector<1x8x128xf32>
    %12 = vector.extract_strided_slice %8 {offsets = [0, 0], sizes = [8, 128], strides = [1, 1]} : vector<8x512xf32> to vector<8x128xf32>
    %13 = vector.shape_cast %12 : vector<8x128xf32> to vector<1x8x128xf32>
    %14 = vector.extract_strided_slice %9 {offsets = [0, 0], sizes = [8, 128], strides = [1, 1]} : vector<8x512xf32> to vector<8x128xf32>
    %15 = vector.shape_cast %14 : vector<8x128xf32> to vector<1x8x128xf32>
    "tpu.trace_start"() <{level = 10 : i32, message = "bid,bjd->bij"}> : () -> ()
    %cst_6 = arith.constant dense<0.000000e+00> : vector<1x8x8xf32>
    %16 = tpu.matmul %11, %13, %cst_6 {dimension_numbers = #tpu.dot_dimension_numbers<[2], [2], [1], [1], [0, 0, 0, 1, 1, 1], [0], [0]>} : vector<1x8x128xf32>, vector<1x8x128xf32>, vector<1x8x8xf32> -> vector<1x8x8xf32>
    "tpu.trace_stop"() : () -> ()
    %cst_7 = arith.constant dense<0xFF800000> : vector<1x8xf32>
    %17 = vector.multi_reduction <maximumf>, %16, %cst_7 [2] : vector<1x8x8xf32> to vector<1x8xf32>
    %18 = vector.shape_cast %17 : vector<1x8xf32> to vector<1x8x1xf32>
    %19 = vector.broadcast %18 : vector<1x8x1xf32> to vector<1x8x8xf32>
    %20 = arith.subf %16, %19 : vector<1x8x8xf32>
    %21 = math.exp %20 : vector<1x8x8xf32>
    %cst_8 = arith.constant dense<0.000000e+00> : vector<1x8xf32>
    %22 = vector.multi_reduction <add>, %21, %cst_8 [2] : vector<1x8x8xf32> to vector<1x8xf32>
    %23 = vector.shape_cast %22 : vector<1x8xf32> to vector<1x8x1xf32>
    %24 = tpu.reciprocal %23 {approx = true} : vector<1x8x1xf32> -> vector<1x8x1xf32>
    %25 = arith.mulf %23, %24 : vector<1x8x1xf32>
    %cst_9 = arith.constant 2.000000e+00 : f32
    %26 = vector.broadcast %cst_9 : f32 to vector<1x8x1xf32>
    %27 = arith.subf %26, %25 : vector<1x8x1xf32>
    %28 = arith.mulf %24, %27 : vector<1x8x1xf32>
    "tpu.trace_start"() <{level = 10 : i32, message = "bij,bjd->bid"}> : () -> ()
    %cst_10 = arith.constant dense<0.000000e+00> : vector<1x8x128xf32>
    %29 = tpu.matmul %21, %15, %cst_10 {dimension_numbers = #tpu.dot_dimension_numbers<[2], [1], [1], [2], [0, 0, 0, 1, 1, 2], [0], [0]>} : vector<1x8x8xf32>, vector<1x8x128xf32>, vector<1x8x128xf32> -> vector<1x8x128xf32>
    "tpu.trace_stop"() : () -> ()
    %30 = vector.broadcast %28 : vector<1x8x1xf32> to vector<1x8x128xf32>
    %31 = arith.mulf %29, %30 : vector<1x8x128xf32>
    %32 = vector.shape_cast %31 : vector<1x8x128xf32> to vector<8x128xf32>
    %33 = vector.extract_strided_slice %7 {offsets = [0, 128], sizes = [8, 128], strides = [1, 1]} : vector<8x512xf32> to vector<8x128xf32>
    %34 = vector.shape_cast %33 : vector<8x128xf32> to vector<1x8x128xf32>
    %35 = vector.extract_strided_slice %8 {offsets = [0, 128], sizes = [8, 128], strides = [1, 1]} : vector<8x512xf32> to vector<8x128xf32>
    %36 = vector.shape_cast %35 : vector<8x128xf32> to vector<1x8x128xf32>
    %37 = vector.extract_strided_slice %9 {offsets = [0, 128], sizes = [8, 128], strides = [1, 1]} : vector<8x512xf32> to vector<8x128xf32>
    %38 = vector.shape_cast %37 : vector<8x128xf32> to vector<1x8x128xf32>
    "tpu.trace_start"() <{level = 10 : i32, message = "bid,bjd->bij"}> : () -> ()
    %cst_11 = arith.constant dense<0.000000e+00> : vector<1x8x8xf32>
    %39 = tpu.matmul %34, %36, %cst_11 {dimension_numbers = #tpu.dot_dimension_numbers<[2], [2], [1], [1], [0, 0, 0, 1, 1, 1], [0], [0]>} : vector<1x8x128xf32>, vector<1x8x128xf32>, vector<1x8x8xf32> -> vector<1x8x8xf32>
    "tpu.trace_stop"() : () -> ()
    %cst_12 = arith.constant dense<0xFF800000> : vector<1x8xf32>
    %40 = vector.multi_reduction <maximumf>, %39, %cst_12 [2] : vector<1x8x8xf32> to vector<1x8xf32>
    %41 = vector.shape_cast %40 : vector<1x8xf32> to vector<1x8x1xf32>
    %42 = vector.broadcast %41 : vector<1x8x1xf32> to vector<1x8x8xf32>
    %43 = arith.subf %39, %42 : vector<1x8x8xf32>
    %44 = math.exp %43 : vector<1x8x8xf32>
    %cst_13 = arith.constant dense<0.000000e+00> : vector<1x8xf32>
    %45 = vector.multi_reduction <add>, %44, %cst_13 [2] : vector<1x8x8xf32> to vector<1x8xf32>
    %46 = vector.shape_cast %45 : vector<1x8xf32> to vector<1x8x1xf32>
    %47 = tpu.reciprocal %46 {approx = true} : vector<1x8x1xf32> -> vector<1x8x1xf32>
    %48 = arith.mulf %46, %47 : vector<1x8x1xf32>
    %cst_14 = arith.constant 2.000000e+00 : f32
    %49 = vector.broadcast %cst_14 : f32 to vector<1x8x1xf32>
    %50 = arith.subf %49, %48 : vector<1x8x1xf32>
    %51 = arith.mulf %47, %50 : vector<1x8x1xf32>
    "tpu.trace_start"() <{level = 10 : i32, message = "bij,bjd->bid"}> : () -> ()
    %cst_15 = arith.constant dense<0.000000e+00> : vector<1x8x128xf32>
    %52 = tpu.matmul %44, %38, %cst_15 {dimension_numbers = #tpu.dot_dimension_numbers<[2], [1], [1], [2], [0, 0, 0, 1, 1, 2], [0], [0]>} : vector<1x8x8xf32>, vector<1x8x128xf32>, vector<1x8x128xf32> -> vector<1x8x128xf32>
    "tpu.trace_stop"() : () -> ()
    %53 = vector.broadcast %51 : vector<1x8x1xf32> to vector<1x8x128xf32>
    %54 = arith.mulf %52, %53 : vector<1x8x128xf32>
    %55 = vector.shape_cast %54 : vector<1x8x128xf32> to vector<8x128xf32>
    %56 = vector.extract_strided_slice %7 {offsets = [0, 256], sizes = [8, 128], strides = [1, 1]} : vector<8x512xf32> to vector<8x128xf32>
    %57 = vector.shape_cast %56 : vector<8x128xf32> to vector<1x8x128xf32>
    %58 = vector.extract_strided_slice %8 {offsets = [0, 256], sizes = [8, 128], strides = [1, 1]} : vector<8x512xf32> to vector<8x128xf32>
    %59 = vector.shape_cast %58 : vector<8x128xf32> to vector<1x8x128xf32>
    %60 = vector.extract_strided_slice %9 {offsets = [0, 256], sizes = [8, 128], strides = [1, 1]} : vector<8x512xf32> to vector<8x128xf32>
    %61 = vector.shape_cast %60 : vector<8x128xf32> to vector<1x8x128xf32>
    "tpu.trace_start"() <{level = 10 : i32, message = "bid,bjd->bij"}> : () -> ()
    %cst_16 = arith.constant dense<0.000000e+00> : vector<1x8x8xf32>
    %62 = tpu.matmul %57, %59, %cst_16 {dimension_numbers = #tpu.dot_dimension_numbers<[2], [2], [1], [1], [0, 0, 0, 1, 1, 1], [0], [0]>} : vector<1x8x128xf32>, vector<1x8x128xf32>, vector<1x8x8xf32> -> vector<1x8x8xf32>
    "tpu.trace_stop"() : () -> ()
    %cst_17 = arith.constant dense<0xFF800000> : vector<1x8xf32>
    %63 = vector.multi_reduction <maximumf>, %62, %cst_17 [2] : vector<1x8x8xf32> to vector<1x8xf32>
    %64 = vector.shape_cast %63 : vector<1x8xf32> to vector<1x8x1xf32>
    %65 = vector.broadcast %64 : vector<1x8x1xf32> to vector<1x8x8xf32>
    %66 = arith.subf %62, %65 : vector<1x8x8xf32>
    %67 = math.exp %66 : vector<1x8x8xf32>
    %cst_18 = arith.constant dense<0.000000e+00> : vector<1x8xf32>
    %68 = vector.multi_reduction <add>, %67, %cst_18 [2] : vector<1x8x8xf32> to vector<1x8xf32>
    %69 = vector.shape_cast %68 : vector<1x8xf32> to vector<1x8x1xf32>
    %70 = tpu.reciprocal %69 {approx = true} : vector<1x8x1xf32> -> vector<1x8x1xf32>
    %71 = arith.mulf %69, %70 : vector<1x8x1xf32>
    %cst_19 = arith.constant 2.000000e+00 : f32
    %72 = vector.broadcast %cst_19 : f32 to vector<1x8x1xf32>
    %73 = arith.subf %72, %71 : vector<1x8x1xf32>
    %74 = arith.mulf %70, %73 : vector<1x8x1xf32>
    "tpu.trace_start"() <{level = 10 : i32, message = "bij,bjd->bid"}> : () -> ()
    %cst_20 = arith.constant dense<0.000000e+00> : vector<1x8x128xf32>
    %75 = tpu.matmul %67, %61, %cst_20 {dimension_numbers = #tpu.dot_dimension_numbers<[2], [1], [1], [2], [0, 0, 0, 1, 1, 2], [0], [0]>} : vector<1x8x8xf32>, vector<1x8x128xf32>, vector<1x8x128xf32> -> vector<1x8x128xf32>
    "tpu.trace_stop"() : () -> ()
    %76 = vector.broadcast %74 : vector<1x8x1xf32> to vector<1x8x128xf32>
    %77 = arith.mulf %75, %76 : vector<1x8x128xf32>
    %78 = vector.shape_cast %77 : vector<1x8x128xf32> to vector<8x128xf32>
    %79 = vector.extract_strided_slice %7 {offsets = [0, 384], sizes = [8, 128], strides = [1, 1]} : vector<8x512xf32> to vector<8x128xf32>
    %80 = vector.shape_cast %79 : vector<8x128xf32> to vector<1x8x128xf32>
    %81 = vector.extract_strided_slice %8 {offsets = [0, 384], sizes = [8, 128], strides = [1, 1]} : vector<8x512xf32> to vector<8x128xf32>
    %82 = vector.shape_cast %81 : vector<8x128xf32> to vector<1x8x128xf32>
    %83 = vector.extract_strided_slice %9 {offsets = [0, 384], sizes = [8, 128], strides = [1, 1]} : vector<8x512xf32> to vector<8x128xf32>
    %84 = vector.shape_cast %83 : vector<8x128xf32> to vector<1x8x128xf32>
    "tpu.trace_start"() <{level = 10 : i32, message = "bid,bjd->bij"}> : () -> ()
    %cst_21 = arith.constant dense<0.000000e+00> : vector<1x8x8xf32>
    %85 = tpu.matmul %80, %82, %cst_21 {dimension_numbers = #tpu.dot_dimension_numbers<[2], [2], [1], [1], [0, 0, 0, 1, 1, 1], [0], [0]>} : vector<1x8x128xf32>, vector<1x8x128xf32>, vector<1x8x8xf32> -> vector<1x8x8xf32>
    "tpu.trace_stop"() : () -> ()
    %cst_22 = arith.constant dense<0xFF800000> : vector<1x8xf32>
    %86 = vector.multi_reduction <maximumf>, %85, %cst_22 [2] : vector<1x8x8xf32> to vector<1x8xf32>
    %87 = vector.shape_cast %86 : vector<1x8xf32> to vector<1x8x1xf32>
    %88 = vector.broadcast %87 : vector<1x8x1xf32> to vector<1x8x8xf32>
    %89 = arith.subf %85, %88 : vector<1x8x8xf32>
    %90 = math.exp %89 : vector<1x8x8xf32>
    %cst_23 = arith.constant dense<0.000000e+00> : vector<1x8xf32>
    %91 = vector.multi_reduction <add>, %90, %cst_23 [2] : vector<1x8x8xf32> to vector<1x8xf32>
    %92 = vector.shape_cast %91 : vector<1x8xf32> to vector<1x8x1xf32>
    %93 = tpu.reciprocal %92 {approx = true} : vector<1x8x1xf32> -> vector<1x8x1xf32>
    %94 = arith.mulf %92, %93 : vector<1x8x1xf32>
    %cst_24 = arith.constant 2.000000e+00 : f32
    %95 = vector.broadcast %cst_24 : f32 to vector<1x8x1xf32>
    %96 = arith.subf %95, %94 : vector<1x8x1xf32>
    %97 = arith.mulf %93, %96 : vector<1x8x1xf32>
    "tpu.trace_start"() <{level = 10 : i32, message = "bij,bjd->bid"}> : () -> ()
    %cst_25 = arith.constant dense<0.000000e+00> : vector<1x8x128xf32>
    %98 = tpu.matmul %90, %84, %cst_25 {dimension_numbers = #tpu.dot_dimension_numbers<[2], [1], [1], [2], [0, 0, 0, 1, 1, 2], [0], [0]>} : vector<1x8x8xf32>, vector<1x8x128xf32>, vector<1x8x128xf32> -> vector<1x8x128xf32>
    "tpu.trace_stop"() : () -> ()
    %99 = vector.broadcast %97 : vector<1x8x1xf32> to vector<1x8x128xf32>
    %100 = arith.mulf %98, %99 : vector<1x8x128xf32>
    %101 = vector.shape_cast %100 : vector<1x8x128xf32> to vector<8x128xf32>
    %102 = tpu.concatenate %32, %55, %78, %101 in 1 : vector<8x128xf32>, vector<8x128xf32>, vector<8x128xf32>, vector<8x128xf32> -> vector<8x512xf32>
    %c0_26 = arith.constant 0 : index
    %c0_27 = arith.constant 0 : index
    %103 = vector.load %arg4[%c0_26, %c0_27] : memref<512x128xf32, #tpu.memory_space<vmem>>, vector<512x128xf32>
    %cst_28 = arith.constant dense<0.000000e+00> : vector<8x128xf32>
    %104 = tpu.matmul %102, %103, %cst_28 {dimension_numbers = #tpu.dot_dimension_numbers<[1], [0], [0], [1], [0, 0, 1, 1], [], []>} : vector<8x512xf32>, vector<512x128xf32>, vector<8x128xf32> -> vector<8x128xf32>
    %c0_29 = arith.constant 0 : index
    %c0_30 = arith.constant 0 : index
    %105 = vector.load %arg5[%c0_29, %c0_30] : memref<1x128xf32, #tpu.memory_space<vmem>>, vector<1x128xf32>
    %106 = vector.broadcast %105 : vector<1x128xf32> to vector<8x128xf32>
    %107 = arith.addf %104, %106 : vector<8x128xf32>
    %108 = vector.shape_cast %107 : vector<8x128xf32> to vector<1x8x128xf32>
    %c0_31 = arith.constant 0 : index
    %c0_32 = arith.constant 0 : index
    %c0_33 = arith.constant 0 : index
    %109 = vector.load %arg6[%c0_31, %c0_32, %c0_33] : memref<1x8x128xf32, #tpu.memory_space<vmem>>, vector<1x8x128xf32>
    tpu.vector_store %arg6[%c0_31, %c0_32, %c0_33], %108 {strides = array<i32>} : memref<1x8x128xf32, #tpu.memory_space<vmem>>, vector<1x8x128xf32>,
    return
  }
  func.func @transform_0(%arg0: i32) -> (i32, i32, i32) {
    %c0_i32 = arith.constant 0 : i32
    %c0_i32_0 = arith.constant 0 : i32
    %c0_i32_1 = arith.constant 0 : i32
    return %arg0, %c0_i32, %c0_i32_0 : i32, i32, i32
  }
  func.func @transform_1(%arg0: i32) -> (i32, i32) {
    %c0_i32 = arith.constant 0 : i32
    %c0_i32_0 = arith.constant 0 : i32
    %c0_i32_1 = arith.constant 0 : i32
    return %c0_i32, %c0_i32_0 : i32, i32
  }
  func.func @transform_2(%arg0: i32) -> (i32, i32) {
    %c0_i32 = arith.constant 0 : i32
    %c0_i32_0 = arith.constant 0 : i32
    %c0_i32_1 = arith.constant 0 : i32
    return %c0_i32, %c0_i32_0 : i32, i32
  }
  func.func @transform_3(%arg0: i32) -> (i32, i32) {
    %c0_i32 = arith.constant 0 : i32
    %c0_i32_0 = arith.constant 0 : i32
    %c0_i32_1 = arith.constant 0 : i32
    return %c0_i32, %c0_i32_0 : i32, i32
  }
  func.func @transform_4(%arg0: i32) -> (i32, i32) {
    %c0_i32 = arith.constant 0 : i32
    %c0_i32_0 = arith.constant 0 : i32
    %c0_i32_1 = arith.constant 0 : i32
    return %c0_i32, %c0_i32_0 : i32, i32
  }
  func.func @transform_5(%arg0: i32) -> (i32, i32, i32) {
    %c0_i32 = arith.constant 0 : i32
    %c0_i32_0 = arith.constant 0 : i32
    %c0_i32_1 = arith.constant 0 : i32
    return %arg0, %c0_i32, %c0_i32_0 : i32, i32, i32
  }
}

</mosaic_0001>

<bundles_post_ra>
// kernel: tpu_custom_call.1
= control target key start
LH: loop header
LB: loop body
LE: loop exit
PB: predicated region body
PF: predicated region fallthrough
CT: control target
= control target key end

     0   :  { %10 = vsyncpa [#allocation3], 0  ;;  %s2647_s0 = inlined_call_operand.hbm [shape: f32[2,8,128], index: 0, kind: input, shape index: {}]   ;;  %s2648_s1 = inlined_call_operand.hbm [shape: f32[128,1536], index: 1, kind: input, shape index: {}]   ;;  %s2649_s2 = inlined_call_operand.hbm [shape: f32[1,1536], index: 2, kind: input, shape index: {}]   ;;  %s2650_s3 = inlined_call_operand.hbm [shape: f32[512,128], index: 3, kind: input, shape index: {}]   ;;  %s2651_s4 = inlined_call_operand.vmem [shape: f32[1,128], index: 4, kind: input, shape index: {}]   ;;  %s2652_s5 = inlined_call_operand.hbm [shape: f32[2,8,128], index: 5, kind: output, shape index: {}]  }
   0x1   :  { %12 = vsyncpa [#allocation3 + $0x1], 0 }
   0x2   :  { %13 = vsyncpa [#allocation6], 0 }
   0x3   :  { %14 = vsyncpa [#allocation9], 0 }
   0x4   :  { %15 = vsyncpa [#allocation4], 0 }
   0x5   :  { %17 = vsyncpa [#allocation4 + $0x1], 0  ;;  %s2388_s18 = smov 0   ;;  %s2390_s19 = smov 0  }
   0x6   :  { %s2392_s20 = smov 0   ;;  %s2394_s21 = smov 0  }
   0x7 LB: > { %s2409_s22 = sadd.s32 4294967295, %s2345_s21   ;;  %s1919_s23 = sadd.s32 4294967294, %s2345_s21   ;;  %s2345_s21 = sphi %s2394_s21, %s2676_s21   ;;  %s2341_s20 = sphi %s2392_s20, %s2675_s20   ;;  %s2337_s19 = sphi %s2390_s19, %s2674_s19   ;;  %s2333_s18 = sphi %s2388_s18, %s2673_s18  }
   0x8   : > { %p43_p0 = scmp.ne.s32.totalorder %s2337_s19, %s2333_s18  ;;  %p2653_p1 = scmp.eq.s32.totalorder %s2409_s22, 0 }
   0x9   : > { %p157_p3 = scmp.eq.s32.totalorder %s1919_s23, 1  ;;  %p1920_p5 = scmp.ge.s32.totalorder %s2345_s21, 1 }
   0xa   : > { %p2418_p4 = por %p2653_p1, %p43_p0  ;;  %p164_p7 = scmp.lt.s32.totalorder %s2345_s21, 3 }
   0xb   : > { %p2423_p6 = por %p157_p3, %p43_p0  ;;  %s2347_s27 = smov [#allocation5]  }
   0xc   : > { %s2657_s24 = scalar_select %p2418_p4, 1, 0 }
   0xd   : > { %s2658_s25 = scalar_select %p2423_p6, 1, 0 }
   0xe   : > { %p2428_p8 = pnand %p1920_p5, %p164_p7  ;;  %s176_s28 = sshll.u32 %s2347_s27, 4  ;;  %s177_s28 = int_to_ptr.vmem [resolvable:$true] %s176_s28 }
   0xf   : > { %s2348_s30 = smov [#allocation7]   ;;  %s2349_s7 = smov [#allocation8]  }
  0x10   : > { %s2659_s26 = scalar_select %p2428_p8, 1, 0 }
  0x11   : > { %p2084_p9 = pneg %p2428_p8  ;;  %s190_s6 = sshll.u32 %s2348_s30, 4  ;;  %s191_s6 = int_to_ptr.vmem [resolvable:$true] %s190_s6 }
  0x12   : > { %s200_s8 = sshll.u32 %s2349_s7, 4  ;;  %s2178_s9 = scalar_lea.vmem %s177_s28, 24576  ;;  %s201_s8 = int_to_ptr.vmem [resolvable:$true] %s200_s8 }
  0x13   : > { %p2437_p11 = pnand %p2084_p9, %p2653_p1  ;;  %p2179_p13 = scmp.ne.s32.totalorder %s177_s28, %s2178_s9 }
  0x14   : > { %p2186_p5 = scmp.lt.s32.totalorder %s177_s28, %s177_s28  ;;  %p2187_p7 = scmp.lt.s32.totalorder %s2178_s9, %s2178_s9 }
  0x15   : > { %p2169_p12 = pneg %p2437_p11 }
  0x16   : > { %p2188_p9 = por %p2187_p7, %p2186_p5 }
  0x17   : > { %p2181_p0 = pnand %p2179_p13, %p2169_p12 }
  0x19   : > { %p2182_p3 = pneg %p2181_p0 }
  0x1b   : > { %p2189_p10 = pnand %p2188_p9, %p2182_p3 }
  0x1d   : > { %2192 = shalt.err (!%p2189_p10)
}
  0x1e   : > { %s2350_s10 = smov 1536   ;;  %s2351_s11 = smov 96  }
  0x1f   : > { %2087 = dma.hbm_to_vmem [thread:$0]  (!%p2437_p11), %s2648_s1, 24576, %s177_s28, [#allocation6], %s2350_s10, %s2350_s10, %s2351_s11  }
  0x20   : > { %s2204_s14 = scalar_lea.vmem %s191_s6, 192  ;;  %p2212_p2 = scmp.lt.s32.totalorder %s191_s6, %s191_s6 }
  0x21   : > { %p2205_p1 = scmp.ne.s32.totalorder %s191_s6, %s2204_s14  ;;  %p2213_p6 = scmp.lt.s32.totalorder %s2204_s14, %s2204_s14 }
  0x23   : > { %p2207_p13 = pnand %p2205_p1, %p2169_p12  ;;  %p2214_p5 = por %p2213_p6, %p2212_p2 }
  0x25   : > { %p2208_p0 = pneg %p2207_p13 }
  0x27   : > { %p2215_p3 = pnand %p2214_p5, %p2208_p0 }
  0x29   : > { %2218 = shalt.err (!%p2215_p3)
}
  0x2a   : > { %2090 = dma.hbm_to_vmem [thread:$0]  (!%p2437_p11), %s2649_s2, 192, %s191_s6, [#allocation6]  }
  0x2b   : > { %s2230_s17 = scalar_lea.vmem %s201_s8, 8192  ;;  %p2238_p9 = scmp.lt.s32.totalorder %s201_s8, %s201_s8 }
  0x2c   : > { %p2231_p10 = scmp.ne.s32.totalorder %s201_s8, %s2230_s17  ;;  %p2239_p13 = scmp.lt.s32.totalorder %s2230_s17, %s2230_s17 }
  0x2e   : > { %p2233_p7 = pnand %p2231_p10, %p2169_p12  ;;  %p2240_p4 = por %p2239_p13, %p2238_p9 }
  0x30   : > { %p2234_p1 = pneg %p2233_p7 }
  0x32   : > { %p2241_p2 = pnand %p2240_p4, %p2234_p1 }
  0x34   : > { %2244 = shalt.err (!%p2241_p2)
}
  0x35   : > { %s2352_s23 = smov 128   ;;  %s2353_s27 = smov 8  }
  0x36   : > { %2093 = dma.hbm_to_vmem [thread:$0]  (!%p2437_p11), %s2650_s3, 8192, %s201_s8, [#allocation9], %s2352_s23, %s2352_s23, %s2353_s27  }
  0x37   : > { %s2468_s6 = sadd.s32 1, %s2345_s21   ;;  %s30_s9 = sadd.s32 1, %s2341_s20 }
  0x38   : > { %s27_s7 = ssub.s32 %s2345_s21, %s2468_s6  ;;  %p37_p6 = scmp.ne.s32.totalorder %s2341_s20, %s2337_s19 }
  0x39   : > { %p28_p4 = scmp.eq.s32.totalorder %s27_s7, 0  ;;  %p38_p12 = scmp.eq.s32.totalorder %s2345_s21, 0 }
  0x3a   : > { %p2105_p0 = scmp.lt.s32.totalorder %s2345_s21, 2  ;;  %p2661_p3 = scmp.eq.s32.totalorder %s2409_s22, 1 }
  0x3b   : > { %s2478_s10 = scalar_select %p28_p4, %s2341_s20, %s30_s9  }
  0x3c   : > { %p39_p5 = por %p38_p12, %p37_p6  ;;  %p2482_p10 = por %p2661_p3, %p37_p6 }
  0x3d   : > { %s217_s29 = sand.u32 1, %s2341_s20   ;;  %s1926_s12 = sshll.u32 %s2345_s21, 7 }
  0x3e   : > { %s2662_s11 = scalar_select %p2482_p10, 1, 0 }
  0x3f   : > { %s1925_s8 = sshll.u32 %s217_s29, 3  ;;  %s2491_s15 = scalar_lea.hbm %s2647_s0, %s1926_s12 }
  0x40   : > { %s221_s16 = scalar_lea.vmem [#allocation2], %s1925_s8  ;;  %p2493_p11 = pnand %p2105_p0, %p39_p5 }
  0x41   : > { %s228_s17 = sshll.u32 %s221_s16, 4  ;;  %s218_s27 = scalar_lea.sflag [#allocation3], %s217_s29  ;;  %s229_s17 = int_to_ptr.vmem [resolvable:$true] %s228_s17 }
  0x42   : > { %s2245_s28 = scalar_lea.hbm %s2491_s15, 128  ;;  %p2247_p1 = pneg %p2493_p11 }
  0x43   : > { %p2246_p7 = scmp.ne.s32.totalorder %s2491_s15, %s2245_s28  ;;  %s2250_s9 = scalar_lea.hbm %s2647_s0, 256 }
  0x44   : > { %p2251_p2 = scmp.lt.s32.totalorder %s2491_s15, %s2647_s0  ;;  %p2252_p4 = scmp.lt.s32.totalorder %s2250_s9, %s2245_s28 }
  0x45   : > { %p2248_p9 = pnand %p2247_p1, %p2246_p7 }
  0x46   : > { %p2253_p6 = por %p2252_p4, %p2251_p2 }
  0x47   : > { %p2249_p13 = pneg %p2248_p9 }
  0x49   : > { %p2254_p12 = pnand %p2253_p6, %p2249_p13 }
  0x4b   : > { %2257 = shalt.err (!%p2254_p12)
}
  0x4c   : > { %s2258_s13 = scalar_lea.vmem %s229_s17, 128  ;;  %s2354_s29 = smov [#allocation2]  }
  0x4d   : > { %p2259_p0 = scmp.ne.s32.totalorder %s229_s17, %s2258_s13  ;;  %s2263_s14 = sshll.u32 %s2354_s29, 4  ;;  %s2264_s14 = int_to_ptr.vmem [resolvable:$false] %s2263_s14 }
  0x4e   : > { %s2265_s16 = scalar_lea.vmem %s2264_s14, 256  ;;  %p2266_p7 = scmp.lt.s32.totalorder %s229_s17, %s2264_s14 }
  0x4f   : > { %p2261_p5 = pnand %p2259_p0, %p2247_p1  ;;  %p2267_p9 = scmp.lt.s32.totalorder %s2265_s16, %s2258_s13 }
  0x51   : > { %p2262_p3 = pneg %p2261_p5  ;;  %p2268_p10 = por %p2267_p9, %p2266_p7 }
  0x53   : > { %p2269_p8 = pnand %p2268_p10, %p2262_p3 }
  0x55   : > { %2272 = shalt.err (!%p2269_p8)
}
  0x56   : > { %2097 = dma.hbm_to_vmem [thread:$0]  (!%p2493_p11), %s2491_s15, 128, %s229_s17, %s218_s27  }
  0x57   : > { %p2664_p13 = scmp.ne.s32.totalorder %s2659_s26, 0 }
  0x58   : > { %s2514_s28 = sand.u32 (!%p2664_p13), 1, %s2337_s19   ;;  %p2665_p8 = scmp.ne.s32.totalorder (!%p2664_p13), %s2657_s24, 0 }
  0x59   : > { %237 = sbr.rel (%p2664_p13) target bundleno = 1135 (0x46f), region = 40  ;;  %s1928_s30 = sshll.u32 (!%p2664_p13), %s2514_s28, 3 }
  0x5a   : > { %s240_s7 = scalar_lea.sflag (!%p2664_p13), [#allocation3], %s2514_s28  ;;  %s2520_s9 = scalar_lea.vmem (!%p2664_p13), [#allocation2], %s1928_s30 }
  0x5e   : > { %2316 = dma.done.wait (%p2665_p8), %s240_s7, 128  }
  0x5f   : > { %2318 = vsyncadd (%p2665_p8), %s240_s7, 4294967168  ;;  %p2666_p10 = scmp.eq.s32.totalorder %s2409_s22, 0 }
  0x61   : > { %2320 = dma.done.wait (%p2666_p10), [#allocation6], 24768   ;;  %p2667_p11 = pmov %p2666_p10 }
  0x62   : > { %p2668_p1 = pmov %p2666_p10 }
  0x63   : > { %2322 = vsyncadd (%p2667_p11), [#allocation6], 4294942528 }
  0x64   : > { %2324 = dma.done.wait (%p2668_p1), [#allocation9], 8192   ;;  %p2669_p2 = pmov %p2668_p1 }
  0x65   : > { %v2355_v0 = vmov 0.0   ;;  %v464_v1 = vld [vmem:[#allocation5 + $0x5a8] sm:$0xff]  ;;  %v463_v2 = vld [vmem:[#allocation5 + $0x5a0] sm:$0xff]  ;;  %v466_v6 = vld [vmem:[#allocation5 + $0x5b8] sm:$0xff]  ;;  %vm2356_vm0 = vmmov 0   ;;  %vm1035_vm1 = vcmask 64512  }
  0x66   : > { %2326 = vsyncadd (%p2669_p2), [#allocation9], 4294959104  ;;  %603 = vmatprep.mubr.f32.mxu0 %v2355_v0  ;;  %674 = vmatprep.mubr.f32.mxu1 %v2355_v0  ;;  %v452_v3 = vld [vmem:[#allocation5 + $0x548] sm:$0xff]  ;;  %v451_v4 = vld [vmem:[#allocation5 + $0x540] sm:$0xff]  ;;  %s1939_s15 = sshll.u32 %s2409_s22, 7  ;;  %s281_s17 = scalar_lea.vmem [#allocation10], %s1928_s30 }
  0x67   : > { %539 = vmatprep.subr.mxu0 %v464_v1  ;;  %v440_v5 = vld [vmem:[#allocation5 + $0x4e8] sm:$0xff]  ;;  %v439_v7 = vld [vmem:[#allocation5 + $0x4e0] sm:$0xff]  ;;  %610 = vmatprep.subr.mxu1 %v466_v6  ;;  %v465_v8 = vld [vmem:[#allocation5 + $0x5b0] sm:$0xff]  ;;  %s1820_s23 = sshll.u32 %s281_s17, 4  ;;  %s1818_s8 = scalar_lea.hbm %s2652_s5, %s1939_s15  ;;  %s1821_s23 = int_to_ptr.vmem [resolvable:$true] %s1820_s23 }
  0x68   : > { %540 = vmatpush1.msra.mxu0 %v463_v2  ;;  %v454_v9 = vld [vmem:[#allocation5 + $0x558] sm:$0xff]  ;;  %v428_v10 = vld [vmem:[#allocation5 + $0x488] sm:$0xff]  ;;  %611 = vmatpush1.msra.mxu1 %v465_v8  ;;  %v453_v11 = vld [vmem:[#allocation5 + $0x550] sm:$0xff]  ;;  %s1807_s13 = scalar_lea.sflag [#allocation4], %s2514_s28  ;;  %s2273_s29 = scalar_lea.vmem %s1821_s23, 128 }
  0x69   : > { %541 = vmatprep.subr.mxu0 %v452_v3  ;;  %v427_v12 = vld [vmem:[#allocation5 + $0x480] sm:$0xff]  ;;  %612 = vmatprep.subr.mxu1 %v454_v9  ;;  %v442_v13 = vld [vmem:[#allocation5 + $0x4f8] sm:$0xff]  ;;  %v441_v14 = vld [vmem:[#allocation5 + $0x4f0] sm:$0xff]  ;;  %p2274_p4 = scmp.ne.s32.totalorder %s1821_s23, %s2273_s29  ;;  %p2670_p6 = scmp.ne.s32.totalorder %s2662_s11, 0 }
  0x6a   : > { %542 = vmatpush1.msra.mxu0 %v451_v4  ;;  %v416_v15 = vld [vmem:[#allocation5 + $0x428] sm:$0xff]  ;;  %613 = vmatpush1.msra.mxu1 %v453_v11  ;;  %v430_v16 = vld [vmem:[#allocation5 + $0x498] sm:$0xff]  ;;  %v415_v17 = vld [vmem:[#allocation5 + $0x420] sm:$0xff]  ;;  %s2357_s14 = smov [#allocation10]  }
  0x6b   : > { %543 = vmatprep.subr.mxu0 %v440_v5  ;;  %614 = vmatprep.subr.mxu1 %v442_v13  ;;  %v429_v18 = vld [vmem:[#allocation5 + $0x490] sm:$0xff]  ;;  %v404_v19 = vld [vmem:[#allocation5 + $0x3c8] sm:$0xff]  ;;  %v418_v20 = vld [vmem:[#allocation5 + $0x438] sm:$0xff]  ;;  %p2275_p12 = pnand %p2274_p4, %p2670_p6  ;;  %s2277_s22 = sshll.u32 %s2357_s14, 4  ;;  %s2278_s22 = int_to_ptr.vmem [resolvable:$false] %s2277_s22 }
  0x6c   : > { %544 = vmatpush1.msra.mxu0 %v439_v7  ;;  %615 = vmatpush1.msra.mxu1 %v441_v14  ;;  %v403_v21 = vld [vmem:[#allocation5 + $0x3c0] sm:$0xff]  ;;  %v417_v22 = vld [vmem:[#allocation5 + $0x430] sm:$0xff]  ;;  %v392_v23 = vld [vmem:[#allocation5 + $0x368] sm:$0xff]  ;;  %s2279_s16 = scalar_lea.vmem %s2278_s22, 256  ;;  %p2280_p5 = scmp.lt.s32.totalorder %s1821_s23, %s2278_s22 }
  0x6d   : > { %545 = vmatprep.subr.mxu0 %v428_v10  ;;  %616 = vmatprep.subr.mxu1 %v430_v16  ;;  %v406_v24 = vld [vmem:[#allocation5 + $0x3d8] sm:$0xff]  ;;  %v391_v25 = vld [vmem:[#allocation5 + $0x360] sm:$0xff]  ;;  %v405_v26 = vld [vmem:[#allocation5 + $0x3d0] sm:$0xff]  ;;  %p2276_p0 = pneg %p2275_p12  ;;  %p2281_p3 = scmp.lt.s32.totalorder %s2279_s16, %s2273_s29 }
  0x6e   : > { %546 = vmatpush1.msra.mxu0 %v427_v12  ;;  %617 = vmatpush1.msra.mxu1 %v429_v18  ;;  %v380_v27 = vld [vmem:[#allocation5 + $0x308] sm:$0xff]  ;;  %v394_v28 = vld [vmem:[#allocation5 + $0x378] sm:$0xff]  ;;  %v379_v29 = vld [vmem:[#allocation5 + $0x300] sm:$0xff] }
  0x6f   : > { %547 = vmatprep.subr.mxu0 %v416_v15  ;;  %618 = vmatprep.subr.mxu1 %v418_v20  ;;  %v393_v30 = vld [vmem:[#allocation5 + $0x370] sm:$0xff]  ;;  %v368_v31 = vld [vmem:[#allocation5 + $0x2a8] sm:$0xff]  ;;  %v382_v32 = vld [vmem:[#allocation5 + $0x318] sm:$0xff]  ;;  %p2282_p7 = por %p2281_p3, %p2280_p5 }
  0x70   : > { %548 = vmatpush1.msra.mxu0 %v415_v17  ;;  %619 = vmatpush1.msra.mxu1 %v417_v22  ;;  %v367_v33 = vld [vmem:[#allocation5 + $0x2a0] sm:$0xff]  ;;  %v381_v34 = vld [vmem:[#allocation5 + $0x310] sm:$0xff]  ;;  %v356_v35 = vld [vmem:[#allocation5 + $0x248] sm:$0xff] }
  0x71   : > { %549 = vmatprep.subr.mxu0 %v404_v19  ;;  %620 = vmatprep.subr.mxu1 %v406_v24  ;;  %v370_v36 = vld [vmem:[#allocation5 + $0x2b8] sm:$0xff]  ;;  %v355_v37 = vld [vmem:[#allocation5 + $0x240] sm:$0xff]  ;;  %v369_v38 = vld [vmem:[#allocation5 + $0x2b0] sm:$0xff]  ;;  %p2283_p9 = pnand %p2282_p7, %p2276_p0 }
  0x72   : > { %550 = vmatpush1.msra.mxu0 %v403_v21  ;;  %621 = vmatpush1.msra.mxu1 %v405_v26  ;;  %v344_v39 = vld [vmem:[#allocation5 + $0x1e8] sm:$0xff]  ;;  %v358_v40 = vld [vmem:[#allocation5 + $0x258] sm:$0xff]  ;;  %v343_v41 = vld [vmem:[#allocation5 + $0x1e0] sm:$0xff] }
  0x73   : > { %551 = vmatprep.subr.mxu0 %v392_v23  ;;  %622 = vmatprep.subr.mxu1 %v394_v28  ;;  %v357_v42 = vld [vmem:[#allocation5 + $0x250] sm:$0xff]  ;;  %v332_v43 = vld [vmem:[#allocation5 + $0x188] sm:$0xff]  ;;  %v346_v44 = vld [vmem:[#allocation5 + $0x1f8] sm:$0xff] }
  0x74   : > { %552 = vmatpush1.msra.mxu0 %v391_v25  ;;  %623 = vmatpush1.msra.mxu1 %v393_v30  ;;  %v331_v45 = vld [vmem:[#allocation5 + $0x180] sm:$0xff]  ;;  %v345_v46 = vld [vmem:[#allocation5 + $0x1f0] sm:$0xff]  ;;  %v320_v47 = vld [vmem:[#allocation5 + $0x128] sm:$0xff] }
  0x75   : > { %553 = vmatprep.subr.mxu0 %v380_v27  ;;  %624 = vmatprep.subr.mxu1 %v382_v32  ;;  %v334_v48 = vld [vmem:[#allocation5 + $0x198] sm:$0xff]  ;;  %v319_v49 = vld [vmem:[#allocation5 + $0x120] sm:$0xff]  ;;  %v333_v50 = vld [vmem:[#allocation5 + $0x190] sm:$0xff] }
  0x76   : > { %554 = vmatpush1.msra.mxu0 %v379_v29  ;;  %625 = vmatpush1.msra.mxu1 %v381_v34  ;;  %v308_v51 = vld [vmem:[#allocation5 + $0xc8] sm:$0xff]  ;;  %v322_v52 = vld [vmem:[#allocation5 + $0x138] sm:$0xff]  ;;  %v307_v53 = vld [vmem:[#allocation5 + $0xc0] sm:$0xff] }
  0x77   : > { %555 = vmatprep.subr.mxu0 %v368_v31  ;;  %626 = vmatprep.subr.mxu1 %v370_v36  ;;  %v321_v54 = vld [vmem:[#allocation5 + $0x130] sm:$0xff]  ;;  %v296_v55 = vld [vmem:[#allocation5 + $0x68] sm:$0xff]  ;;  %v310_v56 = vld [vmem:[#allocation5 + $0xd8] sm:$0xff] }
  0x78   : > { %556 = vmatpush1.msra.mxu0 %v367_v33  ;;  %627 = vmatpush1.msra.mxu1 %v369_v38  ;;  %v295_v57 = vld [vmem:[#allocation5 + $0x60] sm:$0xff]  ;;  %v309_v58 = vld [vmem:[#allocation5 + $0xd0] sm:$0xff]  ;;  %v284_v59 = vld [vmem:[#allocation5 + $0x8] sm:$0xff] }
  0x79   : > { %557 = vmatprep.subr.mxu0 %v356_v35  ;;  %628 = vmatprep.subr.mxu1 %v358_v40  ;;  %v298_v60 = vld [vmem:[#allocation5 + $0x78] sm:$0xff]  ;;  %v283_v61 = vld [vmem:[#allocation5] sm:$0xff]  ;;  %v297_v62 = vld [vmem:[#allocation5 + $0x70] sm:$0xff] }
  0x7a   : > { %558 = vmatpush1.msra.mxu0 %v355_v37  ;;  %629 = vmatpush1.msra.mxu1 %v357_v42  ;;  %v2537_v63 = vld [vmem:[%s2520_s9] sm:$0xff]  ;;  %v468_v1 = vld [vmem:[#allocation5 + $0x5c8] sm:$0xff]  ;;  %v467_v2 = vld [vmem:[#allocation5 + $0x5c0] sm:$0xff] }
  0x7b   : > { %559 = vmatprep.subr.mxu0 %v344_v39  ;;  %630 = vmatprep.subr.mxu1 %v346_v44  ;;  %v286_v3 = vld [vmem:[#allocation5 + $0x18] sm:$0xff]  ;;  %v456_v4 = vld [vmem:[#allocation5 + $0x568] sm:$0xff]  ;;  %v285_v5 = vld [vmem:[#allocation5 + $0x10] sm:$0xff] }
  0x7c   : > { %560 = vmatpush1.msra.mxu0 %v343_v41  ;;  %631 = vmatpush1.msra.mxu1 %v345_v46  ;;  %v455_v6 = vld [vmem:[#allocation5 + $0x560] sm:$0xff]  ;;  %v470_v7 = vld [vmem:[#allocation5 + $0x5d8] sm:$0xff]  ;;  %v444_v8 = vld [vmem:[#allocation5 + $0x508] sm:$0xff] }
  0x7d   : > { %561 = vmatprep.subr.mxu0 %v332_v43  ;;  %632 = vmatprep.subr.mxu1 %v334_v48  ;;  %v443_v9 = vld [vmem:[#allocation5 + $0x500] sm:$0xff]  ;;  %v469_v10 = vld [vmem:[#allocation5 + $0x5d0] sm:$0xff]  ;;  %v432_v11 = vld [vmem:[#allocation5 + $0x4a8] sm:$0xff] }
  0x7e   : > { %562 = vmatpush1.msra.mxu0 %v331_v45  ;;  %633 = vmatpush1.msra.mxu1 %v333_v50  ;;  %v458_v12 = vld [vmem:[#allocation5 + $0x578] sm:$0xff]  ;;  %v431_v13 = vld [vmem:[#allocation5 + $0x4a0] sm:$0xff]  ;;  %v457_v14 = vld [vmem:[#allocation5 + $0x570] sm:$0xff] }
  0x7f   : > { %563 = vmatprep.subr.mxu0 %v320_v47  ;;  %634 = vmatprep.subr.mxu1 %v322_v52  ;;  %v420_v15 = vld [vmem:[#allocation5 + $0x448] sm:$0xff]  ;;  %v446_v16 = vld [vmem:[#allocation5 + $0x518] sm:$0xff]  ;;  %v419_v17 = vld [vmem:[#allocation5 + $0x440] sm:$0xff] }
  0x80   : > { %564 = vmatpush1.msra.mxu0 %v319_v49  ;;  %635 = vmatpush1.msra.mxu1 %v321_v54  ;;  %v445_v18 = vld [vmem:[#allocation5 + $0x510] sm:$0xff]  ;;  %v408_v19 = vld [vmem:[#allocation5 + $0x3e8] sm:$0xff]  ;;  %v434_v20 = vld [vmem:[#allocation5 + $0x4b8] sm:$0xff] }
  0x81   : > { %565 = vmatprep.subr.mxu0 %v308_v51  ;;  %636 = vmatprep.subr.mxu1 %v310_v56  ;;  %v407_v21 = vld [vmem:[#allocation5 + $0x3e0] sm:$0xff]  ;;  %v433_v22 = vld [vmem:[#allocation5 + $0x4b0] sm:$0xff]  ;;  %v396_v23 = vld [vmem:[#allocation5 + $0x388] sm:$0xff] }
  0x82   : > { %566 = vmatpush1.msra.mxu0 %v307_v53  ;;  %637 = vmatpush1.msra.mxu1 %v309_v58  ;;  %v422_v24 = vld [vmem:[#allocation5 + $0x458] sm:$0xff]  ;;  %v395_v25 = vld [vmem:[#allocation5 + $0x380] sm:$0xff]  ;;  %v421_v26 = vld [vmem:[#allocation5 + $0x450] sm:$0xff] }
  0x83   : > { %567 = vmatprep.subr.mxu0 %v296_v55  ;;  %638 = vmatprep.subr.mxu1 %v298_v60  ;;  %v384_v27 = vld [vmem:[#allocation5 + $0x328] sm:$0xff]  ;;  %v410_v28 = vld [vmem:[#allocation5 + $0x3f8] sm:$0xff]  ;;  %v383_v29 = vld [vmem:[#allocation5 + $0x320] sm:$0xff] }
  0x84   : > { %568 = vmatpush1.msra.mxu0 %v295_v57  ;;  %639 = vmatpush1.msra.mxu1 %v297_v62  ;;  %v409_v30 = vld [vmem:[#allocation5 + $0x3f0] sm:$0xff]  ;;  %v372_v31 = vld [vmem:[#allocation5 + $0x2c8] sm:$0xff]  ;;  %v398_v32 = vld [vmem:[#allocation5 + $0x398] sm:$0xff] }
  0x85   : > { %569 = vmatprep.subr.mxu0 %v284_v59  ;;  %640 = vmatprep.subr.mxu1 %v286_v3  ;;  %v371_v33 = vld [vmem:[#allocation5 + $0x2c0] sm:$0xff]  ;;  %v397_v34 = vld [vmem:[#allocation5 + $0x390] sm:$0xff]  ;;  %v360_v35 = vld [vmem:[#allocation5 + $0x268] sm:$0xff] }
  0x86   : > { %570 = vmatpush1.msra.mxu0 %v283_v61  ;;  %641 = vmatpush1.msra.mxu1 %v285_v5  ;;  %v386_v36 = vld [vmem:[#allocation5 + $0x338] sm:$0xff]  ;;  %v359_v37 = vld [vmem:[#allocation5 + $0x260] sm:$0xff]  ;;  %v385_v38 = vld [vmem:[#allocation5 + $0x330] sm:$0xff] }
  0x87   : > { %604 = vmatmul.mubr.f32.vlgmr.msra.gmra.mxu0 %v2537_v63  ;;  %681 = vmatprep.subr.mxu0 %v468_v1  ;;  %v348_v39 = vld [vmem:[#allocation5 + $0x208] sm:$0xff]  ;;  %v374_v40 = vld [vmem:[#allocation5 + $0x2d8] sm:$0xff]  ;;  %v347_v41 = vld [vmem:[#allocation5 + $0x200] sm:$0xff] }
  0x88   : > { %682 = vmatpush1.msra.mxu0 %v467_v2  ;;  %752 = vmatprep.subr.mxu1 %v470_v7  ;;  %v373_v42 = vld [vmem:[#allocation5 + $0x2d0] sm:$0xff]  ;;  %v336_v43 = vld [vmem:[#allocation5 + $0x1a8] sm:$0xff]  ;;  %v362_v44 = vld [vmem:[#allocation5 + $0x278] sm:$0xff] }
  0x89   : > { %683 = vmatprep.subr.mxu0 %v456_v4  ;;  %675 = vmatmul.mubr.f32.vlgmr.msra.gmra.mxu1 %v2537_v63  ;;  %v335_v45 = vld [vmem:[#allocation5 + $0x1a0] sm:$0xff]  ;;  %v361_v46 = vld [vmem:[#allocation5 + $0x270] sm:$0xff]  ;;  %v324_v47 = vld [vmem:[#allocation5 + $0x148] sm:$0xff] }
  0x8a   : > { %684 = vmatpush1.msra.mxu0 %v455_v6  ;;  %753 = vmatpush1.msra.mxu1 %v469_v10  ;;  %v350_v48 = vld [vmem:[#allocation5 + $0x218] sm:$0xff]  ;;  %v323_v49 = vld [vmem:[#allocation5 + $0x140] sm:$0xff]  ;;  %v349_v50 = vld [vmem:[#allocation5 + $0x210] sm:$0xff] }
  0x8b   : > { %685 = vmatprep.subr.mxu0 %v444_v8  ;;  %754 = vmatprep.subr.mxu1 %v458_v12  ;;  %v312_v51 = vld [vmem:[#allocation5 + $0xe8] sm:$0xff]  ;;  %v338_v52 = vld [vmem:[#allocation5 + $0x1b8] sm:$0xff]  ;;  %v311_v53 = vld [vmem:[#allocation5 + $0xe0] sm:$0xff] }
  0x8c   : > { %686 = vmatpush1.msra.mxu0 %v443_v9  ;;  %755 = vmatpush1.msra.mxu1 %v457_v14  ;;  %v337_v54 = vld [vmem:[#allocation5 + $0x1b0] sm:$0xff]  ;;  %v300_v55 = vld [vmem:[#allocation5 + $0x88] sm:$0xff]  ;;  %v326_v56 = vld [vmem:[#allocation5 + $0x158] sm:$0xff] }
  0x8d   : > { %687 = vmatprep.subr.mxu0 %v432_v11  ;;  %756 = vmatprep.subr.mxu1 %v446_v16  ;;  %v299_v57 = vld [vmem:[#allocation5 + $0x80] sm:$0xff]  ;;  %v288_v58 = vld [vmem:[#allocation5 + $0x28] sm:$0xff]  ;;  %v325_v59 = vld [vmem:[#allocation5 + $0x150] sm:$0xff] }
  0x8e   : > { %688 = vmatpush1.msra.mxu0 %v431_v13  ;;  %757 = vmatpush1.msra.mxu1 %v445_v18  ;;  %v287_v60 = vld [vmem:[#allocation5 + $0x20] sm:$0xff]  ;;  %v314_v61 = vld [vmem:[#allocation5 + $0xf8] sm:$0xff]  ;;  %v313_v62 = vld [vmem:[#allocation5 + $0xf0] sm:$0xff] }
  0x8f   : > { %689 = vmatprep.subr.mxu0 %v420_v15  ;;  %758 = vmatprep.subr.mxu1 %v434_v20  ;;  %v302_v1 = vld [vmem:[#allocation5 + $0x98] sm:$0xff]  ;;  %v301_v2 = vld [vmem:[#allocation5 + $0x90] sm:$0xff]  ;;  %v472_v5 = vld [vmem:[#allocation5 + $0x5e8] sm:$0xff] }
  0x90   : > { %690 = vmatpush1.msra.mxu0 %v419_v17  ;;  %759 = vmatpush1.msra.mxu1 %v433_v22  ;;  %v290_v3 = vld [vmem:[#allocation5 + $0x38] sm:$0xff]  ;;  %v289_v4 = vld [vmem:[#allocation5 + $0x30] sm:$0xff]  ;;  %v471_v6 = vld [vmem:[#allocation5 + $0x5e0] sm:$0xff] }
  0x91   : > { %691 = vmatprep.subr.mxu0 %v408_v19  ;;  %760 = vmatprep.subr.mxu1 %v422_v24  ;;  %v460_v7 = vld [vmem:[#allocation5 + $0x588] sm:$0xff]  ;;  %v459_v8 = vld [vmem:[#allocation5 + $0x580] sm:$0xff] }
  0x92   : > { %692 = vmatpush1.msra.mxu0 %v407_v21  ;;  %761 = vmatpush1.msra.mxu1 %v421_v26  ;;  %v448_v9 = vld [vmem:[#allocation5 + $0x528] sm:$0xff]  ;;  %v447_v10 = vld [vmem:[#allocation5 + $0x520] sm:$0xff] }
  0x93   : > { %693 = vmatprep.subr.mxu0 %v396_v23  ;;  %762 = vmatprep.subr.mxu1 %v410_v28  ;;  %v436_v11 = vld [vmem:[#allocation5 + $0x4c8] sm:$0xff]  ;;  %v435_v12 = vld [vmem:[#allocation5 + $0x4c0] sm:$0xff] }
  0x94   : > { %694 = vmatpush1.msra.mxu0 %v395_v25  ;;  %763 = vmatpush1.msra.mxu1 %v409_v30  ;;  %v424_v13 = vld [vmem:[#allocation5 + $0x468] sm:$0xff]  ;;  %v423_v14 = vld [vmem:[#allocation5 + $0x460] sm:$0xff] }
  0x95   : > { %695 = vmatprep.subr.mxu0 %v384_v27  ;;  %764 = vmatprep.subr.mxu1 %v398_v32  ;;  %v412_v15 = vld [vmem:[#allocation5 + $0x408] sm:$0xff]  ;;  %v411_v16 = vld [vmem:[#allocation5 + $0x400] sm:$0xff] }
  0x96   : > { %696 = vmatpush1.msra.mxu0 %v383_v29  ;;  %765 = vmatpush1.msra.mxu1 %v397_v34  ;;  %v400_v17 = vld [vmem:[#allocation5 + $0x3a8] sm:$0xff]  ;;  %v399_v18 = vld [vmem:[#allocation5 + $0x3a0] sm:$0xff] }
  0x97   : > { %697 = vmatprep.subr.mxu0 %v372_v31  ;;  %766 = vmatprep.subr.mxu1 %v386_v36  ;;  %v388_v19 = vld [vmem:[#allocation5 + $0x348] sm:$0xff]  ;;  %v387_v20 = vld [vmem:[#allocation5 + $0x340] sm:$0xff] }
  0x98   : > { %698 = vmatpush1.msra.mxu0 %v371_v33  ;;  %767 = vmatpush1.msra.mxu1 %v385_v38  ;;  %v376_v21 = vld [vmem:[#allocation5 + $0x2e8] sm:$0xff]  ;;  %v375_v22 = vld [vmem:[#allocation5 + $0x2e0] sm:$0xff]  ;;  %v473_v38 = vld [vmem:[#allocation5 + $0x5f0] sm:$0xff] }
  0x99   : > { %699 = vmatprep.subr.mxu0 %v360_v35  ;;  %768 = vmatprep.subr.mxu1 %v374_v40  ;;  %v364_v23 = vld [vmem:[#allocation5 + $0x288] sm:$0xff]  ;;  %v363_v24 = vld [vmem:[#allocation5 + $0x280] sm:$0xff]  ;;  %v461_v40 = vld [vmem:[#allocation5 + $0x590] sm:$0xff] }
  0x9a   : > { %700 = vmatpush1.msra.mxu0 %v359_v37  ;;  %769 = vmatpush1.msra.mxu1 %v373_v42  ;;  %v352_v25 = vld [vmem:[#allocation5 + $0x228] sm:$0xff]  ;;  %v351_v26 = vld [vmem:[#allocation5 + $0x220] sm:$0xff]  ;;  %v474_v37 = vld [vmem:[#allocation5 + $0x5f8] sm:$0xff] }
  0x9b   : > { %701 = vmatprep.subr.mxu0 %v348_v39  ;;  %770 = vmatprep.subr.mxu1 %v362_v44  ;;  %v340_v27 = vld [vmem:[#allocation5 + $0x1c8] sm:$0xff]  ;;  %v339_v28 = vld [vmem:[#allocation5 + $0x1c0] sm:$0xff]  ;;  %v462_v39 = vld [vmem:[#allocation5 + $0x598] sm:$0xff] }
  0x9c   : > { %702 = vmatpush1.msra.mxu0 %v347_v41  ;;  %771 = vmatpush1.msra.mxu1 %v361_v46  ;;  %v328_v29 = vld [vmem:[#allocation5 + $0x168] sm:$0xff]  ;;  %v327_v30 = vld [vmem:[#allocation5 + $0x160] sm:$0xff]  ;;  %v450_v41 = vld [vmem:[#allocation5 + $0x538] sm:$0xff] }
  0x9d   : > { %703 = vmatprep.subr.mxu0 %v336_v43  ;;  %772 = vmatprep.subr.mxu1 %v350_v48  ;;  %v316_v31 = vld [vmem:[#allocation5 + $0x108] sm:$0xff]  ;;  %v315_v32 = vld [vmem:[#allocation5 + $0x100] sm:$0xff]  ;;  %v449_v42 = vld [vmem:[#allocation5 + $0x530] sm:$0xff] }
  0x9e   : > { %704 = vmatpush1.msra.mxu0 %v335_v45  ;;  %773 = vmatpush1.msra.mxu1 %v349_v50  ;;  %v304_v33 = vld [vmem:[#allocation5 + $0xa8] sm:$0xff]  ;;  %v303_v34 = vld [vmem:[#allocation5 + $0xa0] sm:$0xff]  ;;  %v438_v43 = vld [vmem:[#allocation5 + $0x4d8] sm:$0xff] }
  0x9f   : > { %705 = vmatprep.subr.mxu0 %v324_v47  ;;  %774 = vmatprep.subr.mxu1 %v338_v52  ;;  %v292_v35 = vld [vmem:[#allocation5 + $0x48] sm:$0xff]  ;;  %v291_v36 = vld [vmem:[#allocation5 + $0x40] sm:$0xff]  ;;  %v437_v44 = vld [vmem:[#allocation5 + $0x4d0] sm:$0xff] }
  0xa0   : > { %706 = vmatpush1.msra.mxu0 %v323_v49  ;;  %775 = vmatpush1.msra.mxu1 %v337_v54  ;;  %v426_v45 = vld [vmem:[#allocation5 + $0x478] sm:$0xff]  ;;  %v425_v46 = vld [vmem:[#allocation5 + $0x470] sm:$0xff] }
  0xa1   : > { %707 = vmatprep.subr.mxu0 %v312_v51  ;;  %776 = vmatprep.subr.mxu1 %v326_v56  ;;  %v414_v47 = vld [vmem:[#allocation5 + $0x418] sm:$0xff]  ;;  %v413_v48 = vld [vmem:[#allocation5 + $0x410] sm:$0xff] }
  0xa2   : > { %708 = vmatpush1.msra.mxu0 %v311_v53  ;;  %745 = vmatprep.mubr.f32.mxu0 %v2355_v0  ;;  %v402_v49 = vld [vmem:[#allocation5 + $0x3b8] sm:$0xff]  ;;  %v401_v50 = vld [vmem:[#allocation5 + $0x3b0] sm:$0xff] }
  0xa3   : > { %709 = vmatprep.subr.mxu0 %v300_v55  ;;  %777 = vmatpush1.msra.mxu1 %v325_v59  ;;  %v390_v51 = vld [vmem:[#allocation5 + $0x358] sm:$0xff]  ;;  %v389_v52 = vld [vmem:[#allocation5 + $0x350] sm:$0xff] }
  0xa4   : > { %710 = vmatpush1.msra.mxu0 %v299_v57  ;;  %778 = vmatprep.subr.mxu1 %v314_v61  ;;  %v378_v53 = vld [vmem:[#allocation5 + $0x2f8] sm:$0xff]  ;;  %v377_v54 = vld [vmem:[#allocation5 + $0x2f0] sm:$0xff] }
  0xa5   : > { %711 = vmatprep.subr.mxu0 %v288_v58  ;;  %779 = vmatpush1.msra.mxu1 %v313_v62  ;;  %v366_v55 = vld [vmem:[#allocation5 + $0x298] sm:$0xff]  ;;  %v365_v56 = vld [vmem:[#allocation5 + $0x290] sm:$0xff] }
  0xa6   : > { %712 = vmatpush1.msra.mxu0 %v287_v60  ;;  %780 = vmatprep.subr.mxu1 %v302_v1  ;;  %v354_v57 = vld [vmem:[#allocation5 + $0x238] sm:$0xff]  ;;  %v353_v58 = vld [vmem:[#allocation5 + $0x230] sm:$0xff] }
  0xa7   : > { %746 = vmatmul.mubr.f32.vlgmr.msra.gmra.mxu0 %v2537_v63  ;;  %816 = vmatprep.mubr.f32.mxu1 %v2355_v0  ;;  %v342_v59 = vld [vmem:[#allocation5 + $0x1d8] sm:$0xff]  ;;  %v341_v60 = vld [vmem:[#allocation5 + $0x1d0] sm:$0xff] }
  0xa8   : > { %781 = vmatpush1.msra.mxu1 %v301_v2  ;;  %887 = vmatprep.mubr.f32.mxu0 %v2355_v0  ;;  %v330_v61 = vld [vmem:[#allocation5 + $0x178] sm:$0xff]  ;;  %v329_v62 = vld [vmem:[#allocation5 + $0x170] sm:$0xff] }
  0xa9   : > { %782 = vmatprep.subr.mxu1 %v290_v3  ;;  %823 = vmatprep.subr.mxu0 %v472_v5  ;;  %v318_v1 = vld [vmem:[#allocation5 + $0x118] sm:$0xff]  ;;  %v317_v2 = vld [vmem:[#allocation5 + $0x110] sm:$0xff] }
  0xaa   : > { %783 = vmatpush1.msra.mxu1 %v289_v4  ;;  %824 = vmatpush1.msra.mxu0 %v471_v6  ;;  %v306_v3 = vld [vmem:[#allocation5 + $0xb8] sm:$0xff]  ;;  %v305_v4 = vld [vmem:[#allocation5 + $0xb0] sm:$0xff] }
  0xab   : > { %817 = vmatmul.mubr.f32.vlgmr.msra.gmra.mxu1 %v2537_v63  ;;  %825 = vmatprep.subr.mxu0 %v460_v7  ;;  %v294_v5 = vld [vmem:[#allocation5 + $0x58] sm:$0xff]  ;;  %v293_v6 = vld [vmem:[#allocation5 + $0x50] sm:$0xff]  ;;  %v479_v7 = vlaneseq }
  0xac   : > { %958 = vmatprep.mubr.f32.mxu1 %v2355_v0  ;;  %826 = vmatpush1.msra.mxu0 %v459_v8 }
  0xad   : > { %827 = vmatprep.subr.mxu0 %v448_v9  ;;  %894 = vmatprep.subr.mxu1 %v474_v37  ;;  %v2555_v8 = vshrl.u32 %v479_v7, 7 }
  0xae   : > { %828 = vmatpush1.msra.mxu0 %v447_v10  ;;  %895 = vmatpush1.msra.mxu1 %v473_v38 }
  0xaf   : > { %829 = vmatprep.subr.mxu0 %v436_v11  ;;  %896 = vmatprep.subr.mxu1 %v462_v39  ;;  %v497_v9 = vsub.s32 4, %v2555_v8  ;;  %v475_v11 = vld [vmem:[#allocation7] sm:$0xff] }
  0xb0   : > { %830 = vmatpush1.msra.mxu0 %v435_v12  ;;  %897 = vmatpush1.msra.mxu1 %v461_v40  ;;  %v481_v12 = vsub.s32 0, %v2555_v8 }
  0xb1   : > { %831 = vmatprep.subr.mxu0 %v424_v13  ;;  %898 = vmatprep.subr.mxu1 %v450_v41  ;;  %v498_v13 = vrot.slane %v475_v11, %v497_v9  ;;  %v476_v41 = vld [vmem:[#allocation7 + $0x8] sm:$0xf] }
  0xb2   : > { %832 = vmatpush1.msra.mxu0 %v423_v14  ;;  %899 = vmatpush1.msra.mxu1 %v449_v42  ;;  %v501_v14 = vsub.s32 5, %v2555_v8  ;;  %v514_v42 = vrot.slane %v476_v41, %v481_v12 }
  0xb3   : > { %833 = vmatprep.subr.mxu0 %v412_v15  ;;  %900 = vmatprep.subr.mxu1 %v438_v43 }
  0xb4   : > { %834 = vmatpush1.msra.mxu0 %v411_v16  ;;  %901 = vmatpush1.msra.mxu1 %v437_v44  ;;  %v482_v16 = vrot.slane %v475_v11, %v481_v12 }
  0xb5   : > { %835 = vmatprep.subr.mxu0 %v400_v17  ;;  %902 = vmatprep.subr.mxu1 %v426_v45  ;;  %v485_v17 = vsub.s32 1, %v2555_v8 }
  0xb6   : > { %836 = vmatpush1.msra.mxu0 %v399_v18  ;;  %903 = vmatpush1.msra.mxu1 %v425_v46 }
  0xb7   : > { %837 = vmatprep.subr.mxu0 %v388_v19  ;;  %904 = vmatprep.subr.mxu1 %v414_v47  ;;  %v518_v7 = vrot.slane %v476_v41, %v485_v17 }
  0xb8   : > { %838 = vmatpush1.msra.mxu0 %v387_v20  ;;  %905 = vmatpush1.msra.mxu1 %v413_v48 }
  0xb9   : > { %839 = vmatprep.subr.mxu0 %v376_v21  ;;  %906 = vmatprep.subr.mxu1 %v402_v49  ;;  %v502_v21 = vrot.slane %v475_v11, %v501_v14 }
  0xba   : > { %840 = vmatpush1.msra.mxu0 %v375_v22  ;;  %907 = vmatpush1.msra.mxu1 %v401_v50 }
  0xbb   : > { %841 = vmatprep.subr.mxu0 %v364_v23  ;;  %908 = vmatprep.subr.mxu1 %v390_v51 }
  0xbc   : > { %842 = vmatpush1.msra.mxu0 %v363_v24  ;;  %909 = vmatpush1.msra.mxu1 %v389_v52 }
  0xbd   : > { %843 = vmatprep.subr.mxu0 %v352_v25  ;;  %910 = vmatprep.subr.mxu1 %v378_v53  ;;  %v486_v25 = vrot.slane %v475_v11, %v485_v17 }
  0xbe   : > { %844 = vmatpush1.msra.mxu0 %v351_v26  ;;  %911 = vmatpush1.msra.mxu1 %v377_v54  ;;  %v489_v26 = vsub.s32 2, %v2555_v8 }
  0xbf   : > { %845 = vmatprep.subr.mxu0 %v340_v27  ;;  %912 = vmatprep.subr.mxu1 %v366_v55 }
  0xc0   : > { %846 = vmatpush1.msra.mxu0 %v339_v28  ;;  %913 = vmatpush1.msra.mxu1 %v365_v56 }
  0xc1   : > { %847 = vmatprep.subr.mxu0 %v328_v29  ;;  %914 = vmatprep.subr.mxu1 %v354_v57  ;;  %v509_v29 = vsub.s32 7, %v2555_v8 }
  0xc2   : > { %848 = vmatpush1.msra.mxu0 %v327_v30  ;;  %915 = vmatpush1.msra.mxu1 %v353_v58 }
  0xc3   : > { %849 = vmatprep.subr.mxu0 %v316_v31  ;;  %916 = vmatprep.subr.mxu1 %v342_v59 }
  0xc4   : > { %850 = vmatpush1.msra.mxu0 %v315_v32  ;;  %917 = vmatpush1.msra.mxu1 %v341_v60 }
  0xc5   : > { %851 = vmatprep.subr.mxu0 %v304_v33  ;;  %918 = vmatprep.subr.mxu1 %v330_v61  ;;  %v490_v33 = vrot.slane %v475_v11, %v489_v26 }
  0xc6   : > { %852 = vmatpush1.msra.mxu0 %v303_v34  ;;  %919 = vmatpush1.msra.mxu1 %v329_v62  ;;  %v493_v34 = vsub.s32 3, %v2555_v8 }
  0xc7   : > { %853 = vmatprep.subr.mxu0 %v292_v35  ;;  %920 = vmatprep.subr.mxu1 %v318_v1  ;;  %v510_v35 = vrot.slane %v475_v11, %v509_v29  ;;  %v1657_v29 = vld [vmem:[#allocation8 + $0x1f8] sm:$0xff] }
  0xc8   : > { %854 = vmatpush1.msra.mxu0 %v291_v36  ;;  %921 = vmatpush1.msra.mxu1 %v317_v2  ;;  %v494_v38 = vrot.slane %v475_v11, %v493_v34 }
  0xc9   : > { %888 = vmatmul.mubr.f32.vlgmr.msra.gmra.mxu0 %v2537_v63  ;;  %2028 = vmatprep.subr.mxu0 %v2355_v0 }
  0xca   : > { %2030 = vmatprep.mubr.msk.f32.mxu0 %vm2356_vm0, %v2355_v0  ;;  %922 = vmatprep.subr.mxu1 %v306_v3 }
  0xcb   : > { %923 = vmatpush1.msra.mxu1 %v305_v4 }
  0xcc   : > { %924 = vmatprep.subr.mxu1 %v294_v5 }
  0xcd   : > { %925 = vmatpush1.msra.mxu1 %v293_v6 }
  0xce   : > { %959 = vmatmul.mubr.f32.vlgmr.msra.gmra.mxu1 %v2537_v63  ;;  %2033 = vmatprep.subr.mxu1 %v2355_v0  ;;  %v505_v63 = vsub.s32 6, %v2555_v8 }
  0xcf   : > { %2035 = vmatprep.mubr.msk.f32.mxu1 %vm2356_vm0, %v2355_v0 }
  0xd0   : > { %v506_v23 = vrot.slane %v475_v11, %v505_v63  ;;  %v526_v63 = vrot.slane %v476_v41, %v493_v34  ;;  %v1655_v34 = vld [vmem:[#allocation8 + $0x1e8] sm:$0xff] }
 0x147   : > { %v605_v10 = vpop.f32.mrf.mxu0 }
 0x148   : > { %v606_v24 = vadd.f32 %v605_v10, %v482_v16  ;;  %v522_v10 = vrot.slane %v476_v41, %v489_v26  ;;  %v1608_v26 = vld [vmem:[#allocation8 + $0x70] sm:$0xff] }
 0x149   : > { %v607_v15 = vpop.f32.mrf.mxu0  ;;  %v676_v18 = vpop.f32.mrf.mxu1  ;;  %v1604_v41 = vld [vmem:[#allocation8 + $0x50] sm:$0xff] }
 0x14a   : > { %v608_v32 = vadd.f32 %v607_v15, %v486_v25  ;;  %v677_v37 = vadd.f32 %v676_v18, %v490_v33  ;;  %v1624_v25 = vld [vmem:[#allocation8 + $0xf0] sm:$0xff] }
 0x14b   : > { %v678_v27 = vpop.f32.mrf.mxu1  ;;  %v1640_v33 = vld [vmem:[#allocation8 + $0x170] sm:$0xff] }
 0x14c   : > { %v679_v40 = vadd.f32 %v678_v27, %v494_v38  ;;  %v1623_v27 = vld [vmem:[#allocation8 + $0xe8] sm:$0xff]  ;;  %v1654_v38 = vld [vmem:[#allocation8 + $0x1e0] sm:$0xff] }
 0x167   : > { %v747_v19 = vpop.f32.mrf.mxu0 }
 0x168   : > { %v748_v20 = vadd.f32 %v747_v19, %v498_v13 }
 0x169   : > { %v749_v22 = vpop.f32.mrf.mxu0 }
 0x16a   : > { %2029 = vmatpush3.xpose.msra.mxu0 %v748_v20  ;;  %v750_v28 = vadd.f32 %v749_v22, %v502_v21 }
 0x16b   : > { %2038 = vmatprep.subr.mxu0 %v2355_v0  ;;  %v818_v30 = vpop.f32.mrf.mxu1 }
 0x16c   : > { %v819_v31 = vadd.f32 %v818_v30, %v506_v23  ;;  %v1625_v23 = vld [vmem:[#allocation8 + $0xf8] sm:$0xff] }
 0x16d   : > { %2031 = vmatmul.mubr.f32.vlgmr.msra.gmra.mxu0 %v606_v24  ;;  %v820_v36 = vpop.f32.mrf.mxu1  ;;  %v1609_v24 = vld [vmem:[#allocation8 + $0x78] sm:$0xff] }
 0x16e   : > { %2039 = vmatpush3.xpose.msra.mxu0 %v750_v28  ;;  %2040 = vmatprep.mubr.msk.f32.mxu0 %vm2356_vm0, %v2355_v0  ;;  %v821_v39 = vadd.f32 %v820_v36, %v510_v35  ;;  %v1607_v28 = vld [vmem:[#allocation8 + $0x68] sm:$0xff]  ;;  %v1641_v30 = vld [vmem:[#allocation8 + $0x178] sm:$0xff] }
 0x16f   : > { %2048 = vmatprep.subr.mxu0 %v2355_v0  ;;  %v1621_v35 = vld [vmem:[#allocation8 + $0xd8] sm:$0xff]  ;;  %v1639_v36 = vld [vmem:[#allocation8 + $0x168] sm:$0xff] }
 0x171   : > { %2041 = vmatmul.mubr.f32.vlgmr.msra.gmra.mxu0 %v608_v32  ;;  %v1606_v32 = vld [vmem:[#allocation8 + $0x60] sm:$0xff] }
 0x172   : > { %2049 = vmatpush3.xpose.msra.mxu0 %v819_v31  ;;  %2050 = vmatprep.mubr.msk.f32.mxu0 %vm2356_vm0, %v2355_v0  ;;  %v1622_v31 = vld [vmem:[#allocation8 + $0xe0] sm:$0xff] }
 0x173   : > { %2058 = vmatprep.subr.mxu0 %v2355_v0 }
 0x175   : > { %2051 = vmatmul.mubr.f32.vlgmr.msra.gmra.mxu0 %v677_v37  ;;  %v1605_v37 = vld [vmem:[#allocation8 + $0x58] sm:$0xff] }
 0x176   : > { %2059 = vmatpush3.xpose.msra.mxu0 %v821_v39  ;;  %2060 = vmatprep.mubr.msk.f32.mxu0 %vm2356_vm0, %v2355_v0  ;;  %v1620_v39 = vld [vmem:[#allocation8 + $0xd0] sm:$0xff] }
 0x177   : > { %1958 = vmatprep.subr.mxu0 %v1625_v23 }
 0x179   : > { %2061 = vmatmul.mubr.f32.vlgmr.msra.gmra.mxu0 %v679_v40  ;;  %v1638_v40 = vld [vmem:[#allocation8 + $0x160] sm:$0xff] }
 0x17a   : > { %1959 = vmatpush3.msra.mxu0 %v1609_v24 }
 0x17b   : > { %1960 = vmatprep.subr.mxu0 %v1624_v25 }
 0x17c   : > { %1961 = vmatpush3.msra.mxu0 %v1608_v26 }
 0x17d   : > { %1962 = vmatprep.subr.mxu0 %v1623_v27 }
 0x17e   : > { %1963 = vmatpush3.msra.mxu0 %v1607_v28 }
 0x17f   : > { %1964 = vmatprep.subr.mxu0 %v1622_v31 }
 0x180   : > { %1965 = vmatpush3.msra.mxu0 %v1606_v32 }
 0x181   : > { %1966 = vmatprep.subr.mxu0 %v1621_v35 }
 0x182   : > { %1967 = vmatpush3.msra.mxu0 %v1605_v37 }
 0x183   : > { %1968 = vmatprep.subr.mxu0 %v1620_v39 }
 0x184   : > { %1969 = vmatpush3.msra.mxu0 %v1604_v41 }
 0x189   : > { %v889_v43 = vpop.f32.mrf.mxu0 }
 0x18a   : > { %v890_v44 = vadd.f32 %v889_v43, %v514_v42  ;;  %v1653_v42 = vld [vmem:[#allocation8 + $0x1d8] sm:$0xff]  ;;  %v1619_v43 = vld [vmem:[#allocation8 + $0xc8] sm:$0xff] }
 0x18b   : > { %v891_v45 = vpop.f32.mrf.mxu0  ;;  %1970 = vmatprep.subr.mxu0 %v1619_v43 }
 0x18c   : > { %2034 = vmatpush3.msra.mxu1 %v890_v44  ;;  %v892_v13 = vadd.f32 %v891_v45, %v518_v7  ;;  %v1637_v44 = vld [vmem:[#allocation8 + $0x158] sm:$0xff]  ;;  %v1603_v45 = vld [vmem:[#allocation8 + $0x48] sm:$0xff]  ;;  %v1632_v7 = vld [vmem:[#allocation8 + $0x130] sm:$0xff] }
 0x18d   : > { %2043 = vmatprep.subr.mxu1 %v2355_v0  ;;  %1971 = vmatpush3.msra.mxu0 %v1603_v45 }
 0x18e   : > { %v960_v11 = vpop.f32.mrf.mxu1 }
 0x18f   : > { %v961_v15 = vadd.f32 %v960_v11, %v522_v10  ;;  %v1647_v10 = vld [vmem:[#allocation8 + $0x1a8] sm:$0xff] }
 0x190   : > { %v962_v16 = vpop.f32.mrf.mxu1  ;;  %v1595_v11 = vld [vmem:[#allocation8 + $0x8] sm:$0xff] }
 0x191   : > { %v963_v19 = vadd.f32 %v962_v16, %v526_v63  ;;  %v1630_v63 = vld [vmem:[#allocation8 + $0x120] sm:$0xff]  ;;  %v1645_v16 = vld [vmem:[#allocation8 + $0x198] sm:$0xff] }
 0x22d   : > { %v1031_v46 = vpop.f32.mrf.mxu0 }
 0x22e   : > { %v1036_v47 = vsel %vm1035_vm1, %v1031_v46, -inf }
 0x22f   : > { %1037 = vmax.xlane.f32.xlu0 %v1036_v47  ;;  %v2032_v48 = vpop.f32.mrf.mxu0  ;;  %v1618_v47 = vld [vmem:[#allocation8 + $0xc0] sm:$0xff] }
 0x230   : > { %v1636_v48 = vld [vmem:[#allocation8 + $0x150] sm:$0xff]  ;;  %1972 = vmatprep.subr.mxu0 %v1618_v47 }
 0x231   : > { %v1189_v49 = vpop.f32.mrf.mxu0 }
 0x232   : > { %v1193_v50 = vsel %vm1035_vm1, %v1189_v49, -inf }
 0x233   : > { %1194 = vmax.xlane.f32.xlu0 %v1193_v50  ;;  %v2042_v51 = vpop.f32.mrf.mxu0  ;;  %v1651_v50 = vld [vmem:[#allocation8 + $0x1c8] sm:$0xff] }
 0x234   : > { %v1617_v51 = vld [vmem:[#allocation8 + $0xb8] sm:$0xff] }
 0x235   : > { %v1346_v52 = vpop.f32.mrf.mxu0 }
 0x236   : > { %v1350_v53 = vsel %vm1035_vm1, %v1346_v52, -inf }
 0x237   : > { %1351 = vmax.xlane.f32.xlu1 %v1350_v53  ;;  %v2052_v54 = vpop.f32.mrf.mxu0  ;;  %v1601_v53 = vld [vmem:[#allocation8 + $0x38] sm:$0xff] }
 0x238   : > { %v1650_v54 = vld [vmem:[#allocation8 + $0x1c0] sm:$0xff] }
 0x239   : > { %v1503_v55 = vpop.f32.mrf.mxu0 }
 0x23a   : > { %v1507_v56 = vsel %vm1035_vm1, %v1503_v55, -inf }
 0x23b   : > { %1508 = vmax.xlane.f32.xlu1 %v1507_v56  ;;  %v2062_v57 = vpop.f32.mrf.mxu0  ;;  %v1634_v56 = vld [vmem:[#allocation8 + $0x140] sm:$0xff] }
 0x23c   : > { %v1600_v57 = vld [vmem:[#allocation8 + $0x30] sm:$0xff] }
 0x2b8   : > { %v1038_v58 = vpop.xlane.xlu0 %1037 }
 0x2b9   : > { %v1039_v59 = vsub.f32 %v1031_v46, %v1038_v58  ;;  %v1652_v46 = vld [vmem:[#allocation8 + $0x1d0] sm:$0xff]  ;;  %v1615_v58 = vld [vmem:[#allocation8 + $0xa8] sm:$0xff] }
 0x2bb   : > { %v1040_v60 = vmul.f32 1.442695, %v1039_v59  ;;  %v1599_v59 = vld [vmem:[#allocation8 + $0x28] sm:$0xff] }
 0x2bc   : > { %v1195_v61 = vpop.xlane.xlu0 %1194 }
 0x2bd   : > { %2151 = vpow2.f32 %v1040_v60  ;;  %v1196_v62 = vsub.f32 %v1189_v49, %v1195_v61  ;;  %v1602_v49 = vld [vmem:[#allocation8 + $0x40] sm:$0xff] }
 0x2be   : > { %1973 = vmatpush3.msra.mxu0 %v1602_v49  ;;  %v1614_v60 = vld [vmem:[#allocation8 + $0xa0] sm:$0xff] }
 0x2bf   : > { %v1197_v1 = vmul.f32 1.442695, %v1196_v62  ;;  %1974 = vmatprep.subr.mxu0 %v1617_v51  ;;  %v1598_v61 = vld [vmem:[#allocation8 + $0x20] sm:$0xff]  ;;  %v1613_v62 = vld [vmem:[#allocation8 + $0x98] sm:$0xff] }
 0x2c0   : > { %v1352_v2 = vpop.xlane.xlu1 %1351  ;;  %1975 = vmatpush3.msra.mxu0 %v1601_v53 }
 0x2c1   : > { %2153 = vpow2.f32 %v1197_v1  ;;  %v1353_v3 = vsub.f32 %v1346_v52, %v1352_v2  ;;  %v1635_v52 = vld [vmem:[#allocation8 + $0x148] sm:$0xff]  ;;  %v1649_v1 = vld [vmem:[#allocation8 + $0x1b8] sm:$0xff] }
 0x2c2   : > { %v1597_v2 = vld [vmem:[#allocation8 + $0x18] sm:$0xff] }
 0x2c3   : > { %v1354_v4 = vmul.f32 1.442695, %v1353_v3  ;;  %v1633_v3 = vld [vmem:[#allocation8 + $0x138] sm:$0xff] }
 0x2c4   : > { %v1509_v5 = vpop.xlane.xlu1 %1508 }
 0x2c5   : > { %2155 = vpow2.f32 %v1354_v4  ;;  %v1510_v6 = vsub.f32 %v1503_v55, %v1509_v5  ;;  %v1616_v55 = vld [vmem:[#allocation8 + $0xb0] sm:$0xff] }
 0x2c6   : > { %1976 = vmatprep.subr.mxu0 %v1616_v55  ;;  %v1612_v4 = vld [vmem:[#allocation8 + $0x90] sm:$0xff] }
 0x2c7   : > { %v1511_v9 = vmul.f32 1.442695, %v1510_v6  ;;  %1977 = vmatpush3.msra.mxu0 %v1600_v57  ;;  %v1648_v5 = vld [vmem:[#allocation8 + $0x1b0] sm:$0xff]  ;;  %v1937_v57 = vld [vmem:[%s2651_s4] ss:$0 sm:$0xff] }
 0x2c8   : > { %1978 = vmatprep.subr.mxu0 %v1615_v58  ;;  %v1596_v6 = vld [vmem:[#allocation8 + $0x10] sm:$0xff] }
 0x2c9   : > { %2157 = vpow2.f32 %v1511_v9  ;;  %1979 = vmatpush3.msra.mxu0 %v1599_v59  ;;  %v1611_v9 = vld [vmem:[#allocation8 + $0x88] sm:$0xff] }
 0x2ca   : > { %v2152_v12 = vpop.eup %2151  ;;  %1980 = vmatprep.subr.mxu0 %v1614_v60 }
 0x2cb   : > { %2036 = vmatmul.mubr.msk.f32.vlgmr.msra.gmra.mxu1 %vm1035_vm1, %v2152_v12  ;;  %v1042_v14 = vsel %vm1035_vm1, %v2152_v12, 0.0  ;;  %1981 = vmatpush3.msra.mxu0 %v1598_v61  ;;  %v1631_v12 = vld [vmem:[#allocation8 + $0x128] sm:$0xff] }
 0x2cc   : > { %2044 = vmatpush3.msra.mxu1 %v892_v13  ;;  %1043 = vadd.xlane.f32.xlu1 %v1042_v14  ;;  %v1610_v13 = vld [vmem:[#allocation8 + $0x80] sm:$0xff] }
 0x2cd   : > { %2045 = vmatprep.mubr.msk.f32.mxu1 %vm2356_vm0, %v2355_v0  ;;  %2053 = vmatprep.subr.mxu1 %v2355_v0  ;;  %v1646_v14 = vld [vmem:[#allocation8 + $0x1a0] sm:$0xff] }
 0x2ce   : > { %v2154_v17 = vpop.eup %2153  ;;  %1982 = vmatprep.subr.mxu0 %v1613_v62 }
 0x2cf   : > { %2046 = vmatmul.mubr.msk.f32.vlgmr.msra.gmra.mxu1 %vm1035_vm1, %v2154_v17  ;;  %v1199_v18 = vsel %vm1035_vm1, %v2154_v17, 0.0  ;;  %1983 = vmatpush3.msra.mxu0 %v1597_v2  ;;  %v1629_v17 = vld [vmem:[#allocation8 + $0x118] sm:$0xff] }
 0x2d0   : > { %2054 = vmatpush3.msra.mxu1 %v961_v15  ;;  %1200 = vadd.xlane.f32.xlu0 %v1199_v18  ;;  %v1594_v15 = vld [vmem:[#allocation8] sm:$0xff]  ;;  %v1644_v18 = vld [vmem:[#allocation8 + $0x190] sm:$0xff] }
 0x2d1   : > { %2055 = vmatprep.mubr.msk.f32.mxu1 %vm2356_vm0, %v2355_v0  ;;  %2063 = vmatprep.subr.mxu1 %v2355_v0 }
 0x2d2   : > { %v2156_v8 = vpop.eup %2155  ;;  %1984 = vmatprep.subr.mxu0 %v1612_v4 }
 0x2d3   : > { %2056 = vmatmul.mubr.msk.f32.vlgmr.msra.gmra.mxu1 %vm1035_vm1, %v2156_v8  ;;  %v1356_v20 = vsel %vm1035_vm1, %v2156_v8, 0.0  ;;  %1985 = vmatpush3.msra.mxu0 %v1596_v6  ;;  %v1643_v8 = vld [vmem:[#allocation8 + $0x188] sm:$0xff] }
 0x2d4   : > { %2064 = vmatpush3.msra.mxu1 %v963_v19  ;;  %1357 = vadd.xlane.f32.xlu1 %v1356_v20  ;;  %v1628_v19 = vld [vmem:[#allocation8 + $0x110] sm:$0xff]  ;;  %v1627_v20 = vld [vmem:[#allocation8 + $0x108] sm:$0xff] }
 0x2d5   : > { %2065 = vmatprep.mubr.msk.f32.mxu1 %vm2356_vm0, %v2355_v0  ;;  %1993 = vmatprep.subr.mxu1 %v1657_v29  ;;  %v1656_v0 = vld [vmem:[#allocation8 + $0x1f0] sm:$0xff] }
 0x2d6   : > { %v2158_v21 = vpop.eup %2157  ;;  %1986 = vmatprep.subr.mxu0 %v1611_v9 }
 0x2d7   : > { %2066 = vmatmul.mubr.msk.f32.vlgmr.msra.gmra.mxu1 %vm1035_vm1, %v2158_v21  ;;  %v1513_v22 = vsel %vm1035_vm1, %v2158_v21, 0.0  ;;  %1987 = vmatpush3.msra.mxu0 %v1595_v11  ;;  %v1642_v21 = vld [vmem:[#allocation8 + $0x180] sm:$0xff] }
 0x2d8   : > { %1514 = vadd.xlane.f32.xlu0 %v1513_v22  ;;  %1994 = vmatpush3.msra.mxu1 %v1641_v30  ;;  %v1626_v22 = vld [vmem:[#allocation8 + $0x100] sm:$0xff] }
 0x2d9   : > { %1995 = vmatprep.subr.mxu1 %v1656_v0  ;;  %1988 = vmatprep.subr.mxu0 %v1610_v13 }
 0x2da   : > { %1996 = vmatpush3.msra.mxu1 %v1640_v33  ;;  %1989 = vmatpush3.msra.mxu0 %v1594_v15 }
 0x2db   : > { %1997 = vmatprep.subr.mxu1 %v1655_v34 }
 0x2dc   : > { %1998 = vmatpush3.msra.mxu1 %v1639_v36 }
 0x2dd   : > { %1999 = vmatprep.subr.mxu1 %v1654_v38 }
 0x2de   : > { %2000 = vmatpush3.msra.mxu1 %v1638_v40 }
 0x2df   : > { %2001 = vmatprep.subr.mxu1 %v1653_v42 }
 0x2e0   : > { %2002 = vmatpush3.msra.mxu1 %v1637_v44 }
 0x2e1   : > { %2003 = vmatprep.subr.mxu1 %v1652_v46 }
 0x2e2   : > { %2004 = vmatpush3.msra.mxu1 %v1636_v48 }
 0x2e3   : > { %2005 = vmatprep.subr.mxu1 %v1651_v50 }
 0x2e4   : > { %2006 = vmatpush3.msra.mxu1 %v1635_v52 }
 0x2e5   : > { %2007 = vmatprep.subr.mxu1 %v1650_v54 }
 0x2e6   : > { %2008 = vmatpush3.msra.mxu1 %v1634_v56 }
 0x2e7   : > { %2009 = vmatprep.subr.mxu1 %v1649_v1 }
 0x2e8   : > { %2010 = vmatpush3.msra.mxu1 %v1633_v3 }
 0x2e9   : > { %2011 = vmatprep.subr.mxu1 %v1648_v5 }
 0x2ea   : > { %2012 = vmatpush3.msra.mxu1 %v1632_v7 }
 0x2eb   : > { %2013 = vmatprep.subr.mxu1 %v1647_v10 }
 0x2ec   : > { %2014 = vmatpush3.msra.mxu1 %v1631_v12 }
 0x2ed   : > { %2015 = vmatprep.subr.mxu1 %v1646_v14 }
 0x2ee   : > { %2016 = vmatpush3.msra.mxu1 %v1630_v63 }
 0x2ef   : > { %2017 = vmatprep.subr.mxu1 %v1645_v16 }
 0x2f0   : > { %2018 = vmatpush3.msra.mxu1 %v1629_v17 }
 0x2f1   : > { %2019 = vmatprep.subr.mxu1 %v1644_v18 }
 0x2f2   : > { %2020 = vmatpush3.msra.mxu1 %v1628_v19 }
 0x2f3   : > { %2021 = vmatprep.subr.mxu1 %v1643_v8 }
 0x2f4   : > { %2022 = vmatpush3.msra.mxu1 %v1627_v20 }
 0x2f5   : > { %2023 = vmatprep.subr.mxu1 %v1642_v21 }
 0x2f6   : > { %2024 = vmatpush3.msra.mxu1 %v1626_v22 }
 0x355   : > { %v1044_v24 = vpop.xlane.xlu1 %1043 }
 0x359   : > { %v1201_v23 = vpop.xlane.xlu0 %1200 }
 0x35a   : > { %2159 = vrcp.f32 %v1201_v23 }
 0x35b   : > { %2161 = vrcp.f32 %v1044_v24 }
 0x35d   : > { %v1358_v26 = vpop.xlane.xlu1 %1357 }
 0x361   : > { %v1515_v25 = vpop.xlane.xlu0 %1514 }
 0x362   : > { %2163 = vrcp.f32 %v1515_v25 }
 0x363   : > { %2165 = vrcp.f32 %v1358_v26 }
 0x367   : > { %v2160_v27 = vpop.eup %2159 }
 0x368   : > { %v2162_v28 = vpop.eup %2161  ;;  %v1203_v29 = vmul.f32 %v2160_v27, %v1201_v23 }
 0x369   : > { %v1046_v30 = vmul.f32 %v2162_v28, %v1044_v24 }
 0x36a   : > { %v1204_v31 = vsub.f32 2.0, %v1203_v29 }
 0x36b   : > { %v1047_v32 = vsub.f32 2.0, %v1046_v30 }
 0x36c   : > { %v1205_v37 = vmul.f32 %v2160_v27, %v1204_v31 }
 0x36d   : > { %v1048_v39 = vmul.f32 %v2162_v28, %v1047_v32 }
 0x36f   : > { %v2164_v0 = vpop.eup %2163 }
 0x370   : > { %v2166_v34 = vpop.eup %2165  ;;  %v1517_v36 = vmul.f32 %v2164_v0, %v1515_v25 }
 0x371   : > { %v1360_v38 = vmul.f32 %v2166_v34, %v1358_v26 }
 0x372   : > { %v1518_v44 = vsub.f32 2.0, %v1517_v36 }
 0x373   : > { %v1361_v45 = vsub.f32 2.0, %v1360_v38 }
 0x374   : > { %v1519_v48 = vmul.f32 %v2164_v0, %v1518_v44 }
 0x375   : > { %v1362_v49 = vmul.f32 %v2166_v34, %v1361_v45 }
 0x38b   : > { %v1118_v33 = vpop.f32.mrf.mxu1 }
 0x38c   : > { %v1122_v42 = vmul.f32 %v1118_v33, %v1048_v39 }
 0x38d   : > { %v2037_v35 = vpop.f32.mrf.mxu1 }
 0x38f   : > { %v1275_v40 = vpop.f32.mrf.mxu1 }
 0x390   : > { %v1279_v41 = vmul.f32 %v1275_v40, %v1205_v37 }
 0x391   : > { %v2047_v43 = vpop.f32.mrf.mxu1 }
 0x392   : > { %1729 = vmatprep.mubr.f32.mxu0 %v1279_v41 }
 0x393   : > { %v1432_v46 = vpop.f32.mrf.mxu1  ;;  %1730 = vmatmul.mubr.f32.vlgmr.msra.gmra.mxu0 %v1122_v42 }
 0x394   : > { %v1436_v52 = vmul.f32 %v1432_v46, %v1362_v49 }
 0x395   : > { %v2057_v47 = vpop.f32.mrf.mxu1 }
 0x397   : > { %v1589_v50 = vpop.f32.mrf.mxu1 }
 0x398   : > { %v1593_v51 = vmul.f32 %v1589_v50, %v1519_v48 }
 0x399   : > { %v2067_v53 = vpop.f32.mrf.mxu1 }
 0x39a   : > { %1799 = vmatprep.mubr.f32.mxu1 %v1593_v51 }
 0x39b   : > { %1800 = vmatmul.mubr.f32.vlgmr.msra.gmra.mxu1 %v1436_v52 }
 0x453   : > { %v1990_v54 = vpop.f32.mrf.mxu0 }
 0x455   : > { %v1991_v55 = vpop.f32.mrf.mxu0 }
 0x456   : > { %v1992_v56 = vadd.f32 %v1991_v55, %v1990_v54 }
 0x458   : > { %v1732_v60 = vadd.f32 %v1992_v56, %v1937_v57 }
 0x45b   : > { %v2025_v58 = vpop.f32.mrf.mxu1 }
 0x45d   : > { %v2026_v59 = vpop.f32.mrf.mxu1 }
 0x45e   : > { %v2027_v61 = vadd.f32 %v2026_v59, %v2025_v58 }
 0x460   : > { %v1802_v62 = vadd.f32 %v2027_v61, %v1732_v60 }
 0x462   : > { %1805 = vst [vmem:[%s281_s17] sm:$0xff] %v1802_v62 }
 0x463   : > { %2286 = shalt.err (!%p2283_p9)
}
 0x464   : > { %s2287_s30 = scalar_lea.hbm %s1818_s8, 128  ;;  %s2291_s9 = scalar_lea.hbm %s2652_s5, 256 }
 0x465   : > { %p2288_p13 = scmp.ne.s32.totalorder %s1818_s8, %s2287_s30  ;;  %p2292_p11 = scmp.lt.s32.totalorder %s1818_s8, %s2652_s5 }
 0x466   : > { %p2293_p1 = scmp.lt.s32.totalorder %s2291_s9, %s2287_s30 }
 0x467   : > { %p2289_p8 = pnand %p2288_p13, %p2670_p6 }
 0x468   : > { %p2294_p2 = por %p2293_p1, %p2292_p11 }
 0x469   : > { %p2290_p10 = pneg %p2289_p8 }
 0x46b   : > { %p2295_p4 = pnand %p2294_p2, %p2290_p10 }
 0x46d   : > { %2298 = shalt.err (!%p2295_p4)
}
 0x46e   : > { %2082 = dma.vmem_to_hbm [thread:$0]  (%p2670_p6), %s1821_s23, 128, %s1818_s8, %s1807_s13  }
 0x46f PF: > { %s1832_s15 = sand.u32 1, %s2333_s18   ;;  %p2671_p12 = scmp.ne.s32.totalorder %s2658_s25, 0 }
 0x470   : > { %p2672_p0 = scmp.ge.s32.totalorder %s2345_s21, 2  ;;  %s1833_s17 = scalar_lea.sflag [#allocation4], %s1832_s15 }
 0x472   : > { %p2099_p5 = pnand %p2672_p0, %p2671_p12 }
 0x474   : > { %p2100_p3 = pneg %p2099_p5 }
 0x476   : > { %2328 = dma.done.wait (%p2100_p3), %s1833_s17, 128  }
 0x477   : > { %2330 = vsyncadd (%p2100_p3), %s1833_s17, 4294967168  ;;  %p20_p7 = scmp.ge.s32.totalorder %s2468_s6, 4   ;;  %s2673_s18 = smov %s2337_s19 }
 0x478   : > { %s2674_s19 = smov %s2341_s20  ;;  %s2675_s20 = smov %s2478_s10 }
 0x479   : > { %s2676_s21 = smov %s2468_s6  ;;  %22 = sbr.rel (!%p20_p7) target bundleno = 7 (0x7), region = 97 }
 0x47e   :  { %1838 = vsyncpa [#allocation3], 1 }
 0x47f   :  { %1840 = vsyncpa [#allocation3 + $0x1], 1 }
 0x480   :  { %1841 = vsyncpa [#allocation6], 1 }
 0x481   :  { %1842 = vsyncpa [#allocation9], 1 }
 0x482   :  { %1843 = vsyncpa [#allocation4], 1 }
 0x483   :  { %1845 = vsyncpa [#allocation4 + $0x1], 1 }

</bundles_post_ra>
